<compile_context>
chip_gen: v7x
topology: tpu7x:2x2x1
jax: 0.10.0
libtpu: 0.0.40
codegen_flags: <defaults>
</compile_context>

<pallas_src>
import functools

import jax
import jax.numpy as jnp
from jax.experimental import pallas as pl
from jax.experimental.pallas import tpu as pltpu

NUM_CLASSES = 3  # {'Tank-M48', 'Tank-M60', 'Tank-leopard'}


# ---------------------------------------------------------------------------
# Fused Pallas kernel: one grid step == one image end-to-end.
# ---------------------------------------------------------------------------

def _effnet_fused_kernel(
    patches_ref,                       # (1, HW, 9*Cin)  im2col'd stem input
    stem_w_ref, stem_b_ref,            # (9*Cin, Cs) bf16 (BN-folded), (1, Cs)
    exp_w_ref, exp_b_ref,              # (Cs, Ce) bf16, (1, Ce)
    dw_w_ref, dw_b_ref,                # (9, Ce) f32 (BN-folded), (1, Ce)
    se_w1_ref, se_b1_ref,              # (Ce, Cq) bf16, (1, Cq)
    se_w2_ref, se_b2_ref,              # (Cq, Ce) bf16, (1, Ce)
    proj_w_ref, proj_b_ref,            # (Ce, Cp) bf16, (1, Cp)
    head_w_ref, head_b_ref,            # (Cp, Ch) bf16, (1, Ch)
    fc_w_ref, fc_b_ref,                # (Ch, 3) bf16, (1, 3)
    out_ref,                           # (1, 1, NUM_CLASSES)
    pad_ref,                           # VMEM scratch (Ho+2, Wo+2, Ce) f32
    *, Ho, Wo):
  f32 = jnp.float32
  bf16 = jnp.bfloat16
  HW = Ho * Wo

  # --- stem: 3x3 stride-2 conv (as im2col matmul) + folded BN + SiLU
  p = patches_ref[0].astype(bf16)                                 # (HW, 9*Cin)
  stem = jnp.dot(p, stem_w_ref[...], preferred_element_type=f32)
  stem = stem + stem_b_ref[...]
  stem = stem * jax.nn.sigmoid(stem)                              # (HW, Cs)

  # --- MBConv expand 1x1 + folded BN + SiLU
  exp = jnp.dot(stem.astype(bf16), exp_w_ref[...],
                preferred_element_type=f32) + exp_b_ref[...]
  exp = exp * jax.nn.sigmoid(exp)                                 # (HW, Ce)
  Ce = exp.shape[-1]

  # --- depthwise 3x3, stride 1, pad 1 + folded BN + SiLU
  # zero-padded VMEM scratch: zero border, write interior, read 9 shifted taps.
  pad_ref[...] = jnp.zeros_like(pad_ref)
  pad_ref[1:Ho + 1, 1:Wo + 1, :] = exp.reshape(Ho, Wo, Ce)
  xpad = pad_ref[...]                                             # (Ho+2, Wo+2, Ce)
  w_dw = dw_w_ref[...]                                            # (9, Ce)
  acc = jnp.zeros((Ho, Wo, Ce), f32)
  k = 0
  for dy in range(3):
    for dx in range(3):
      acc = acc + xpad[dy:dy + Ho, dx:dx + Wo, :] * w_dw[k]
      k += 1
  dw = acc + dw_b_ref[...]
  dw = dw * jax.nn.sigmoid(dw)
  dwf = dw.reshape(HW, Ce)                                        # (HW, Ce)

  # --- Squeeze-and-Excitation: GAP -> FC(SiLU) -> FC(sigmoid) -> channel gate
  s = jnp.mean(dwf, axis=0, keepdims=True)                        # (1, Ce)
  h = jnp.dot(s.astype(bf16), se_w1_ref[...],
              preferred_element_type=f32) + se_b1_ref[...]
  h = h * jax.nn.sigmoid(h)
  g = jnp.dot(h.astype(bf16), se_w2_ref[...],
              preferred_element_type=f32) + se_b2_ref[...]
  g = jax.nn.sigmoid(g)                                           # (1, Ce)
  gated = dwf * g                                                 # gate fused here

  # --- project 1x1 + folded BN (no activation)
  proj = jnp.dot(gated.astype(bf16), proj_w_ref[...],
                 preferred_element_type=f32) + proj_b_ref[...]    # (HW, Cp)

  # --- head 1x1 conv + folded BN + SiLU
  head = jnp.dot(proj.astype(bf16), head_w_ref[...],
                 preferred_element_type=f32) + head_b_ref[...]
  head = head * jax.nn.sigmoid(head)                              # (HW, Ch)

  # --- global average pool + replaced 3-class Linear (dropout = identity, eval)
  pooled = jnp.mean(head, axis=0, keepdims=True)                  # (1, Ch)
  logits = jnp.dot(pooled.astype(bf16), fc_w_ref[...],
                   preferred_element_type=f32) + fc_b_ref[...]    # (1, 3)
  out_ref[...] = logits.reshape(1, 1, -1).astype(out_ref.dtype)


# ---------------------------------------------------------------------------
# Deterministic parameter construction (PyTorch weight layouts, converted and
# BN-folded for eval mode).
# ---------------------------------------------------------------------------

def _bn_fold(key, c, eps=1e-3):
  k1, k2, k3, k4 = jax.random.split(key, 4)
  gamma = 1.0 + 0.1 * jax.random.normal(k1, (c,), jnp.float32)
  beta = 0.1 * jax.random.normal(k2, (c,), jnp.float32)
  mean = 0.1 * jax.random.normal(k3, (c,), jnp.float32)
  var = jnp.abs(jax.random.normal(k4, (c,), jnp.float32)) + 0.5
  scale = gamma / jnp.sqrt(var + eps)
  bias = beta - mean * scale
  return scale, bias


def init_params(key, c_in=3, c_stem=16, c_exp=64, c_sq=16, c_proj=32, c_head=64):
  # TODO(synk): real EffNetModel copies a pretrained EfficientNet; here weights
  # are deterministic random stand-ins with the same layouts/shapes.
  ks = jax.random.split(key, 16)

  def nrm(k, shape, fan_in):
    return jax.random.normal(k, shape, jnp.float32) / jnp.sqrt(float(fan_in))

  p = {}
  # stem conv: torch (Cout, Cin, 3, 3) -> (kh, kw, Cin, Cout) -> (9*Cin, Cout)
  w = nrm(ks[0], (c_stem, c_in, 3, 3), 9 * c_in)
  w = jnp.transpose(w, (2, 3, 1, 0)).reshape(9 * c_in, c_stem)
  s, b = _bn_fold(ks[1], c_stem)
  p["stem_w"] = (w * s[None, :]).astype(jnp.bfloat16)
  p["stem_b"] = b.reshape(1, c_stem)

  # MBConv expand 1x1: torch (Cout, Cin, 1, 1) -> (Cin, Cout)
  w = nrm(ks[2], (c_exp, c_stem, 1, 1), c_stem)
  w = jnp.transpose(w.reshape(c_exp, c_stem), (1, 0))
  s, b = _bn_fold(ks[3], c_exp)
  p["exp_w"] = (w * s[None, :]).astype(jnp.bfloat16)
  p["exp_b"] = b.reshape(1, c_exp)

  # depthwise 3x3: torch (C, 1, 3, 3) -> (kh, kw, C) -> (9, C)  (VPU path, f32)
  w = nrm(ks[4], (c_exp, 1, 3, 3), 9)
  w = jnp.transpose(w.reshape(c_exp, 3, 3), (1, 2, 0)).reshape(9, c_exp)
  s, b = _bn_fold(ks[5], c_exp)
  p["dw_w"] = w * s[None, :]
  p["dw_b"] = b.reshape(1, c_exp)

  # SE: two 1x1 convs -> matrices (Cin, Cout), biases kept f32
  w = nrm(ks[6], (c_sq, c_exp, 1, 1), c_exp)
  p["se_w1"] = jnp.transpose(w.reshape(c_sq, c_exp), (1, 0)).astype(jnp.bfloat16)
  p["se_b1"] = (0.05 * jax.random.normal(ks[7], (c_sq,), jnp.float32)).reshape(1, c_sq)
  w = nrm(ks[8], (c_exp, c_sq, 1, 1), c_sq)
  p["se_w2"] = jnp.transpose(w.reshape(c_exp, c_sq), (1, 0)).astype(jnp.bfloat16)
  p["se_b2"] = (0.05 * jax.random.normal(ks[9], (c_exp,), jnp.float32)).reshape(1, c_exp)

  # project 1x1 (no activation)
  w = nrm(ks[10], (c_proj, c_exp, 1, 1), c_exp)
  w = jnp.transpose(w.reshape(c_proj, c_exp), (1, 0))
  s, b = _bn_fold(ks[11], c_proj)
  p["proj_w"] = (w * s[None, :]).astype(jnp.bfloat16)
  p["proj_b"] = b.reshape(1, c_proj)

  # head 1x1 conv + BN + SiLU
  w = nrm(ks[12], (c_head, c_proj, 1, 1), c_proj)
  w = jnp.transpose(w.reshape(c_head, c_proj), (1, 0))
  s, b = _bn_fold(ks[13], c_head)
  p["head_w"] = (w * s[None, :]).astype(jnp.bfloat16)
  p["head_b"] = b.reshape(1, c_head)

  # replaced classifier: torch Linear (3, c_head) -> (c_head, 3)
  w = nrm(ks[14], (NUM_CLASSES, c_head), c_head)
  p["fc_w"] = jnp.transpose(w, (1, 0)).astype(jnp.bfloat16)
  p["fc_b"] = (0.01 * jax.random.normal(ks[15], (NUM_CLASSES,), jnp.float32)
               ).reshape(1, NUM_CLASSES)
  return p


# ---------------------------------------------------------------------------
# Forward pass: one fused pallas_call over the batch.
# ---------------------------------------------------------------------------

def effnet_forward(params, x_nchw):
  # layout: input is NCHW (PyTorch); convert to NHWC so channels ride the lanes.
  x = jnp.transpose(x_nchw, (0, 2, 3, 1)).astype(jnp.float32)
  N, H, W, Cin = x.shape
  Ho, Wo = H // 2, W // 2
  HW = Ho * Wo

  # stem im2col (stride-2 3x3, pad 1) in XLA: input is tiny and jit fuses this
  # into a single cheap fusion; the inflated patches tensor is ~27 KiB.
  xp = jnp.pad(x, ((0, 0), (1, 1), (1, 1), (0, 0)))
  patches = jnp.concatenate(
      [xp[:, dy:dy + 2 * Ho:2, dx:dx + 2 * Wo:2, :]
       for dy in range(3) for dx in range(3)], axis=-1)            # (N,Ho,Wo,9*Cin)
  patches = patches.reshape(N, HW, 9 * Cin)

  Ce = params["exp_w"].shape[1]

  weights = (
      params["stem_w"], params["stem_b"],
      params["exp_w"], params["exp_b"],
      params["dw_w"], params["dw_b"],
      params["se_w1"], params["se_b1"], params["se_w2"], params["se_b2"],
      params["proj_w"], params["proj_b"],
      params["head_w"], params["head_b"],
      params["fc_w"], params["fc_b"],
  )

  in_specs = [pl.BlockSpec((1, HW, 9 * Cin), lambda n: (n, 0, 0))]
  # all weights/biases are small 2-D arrays; keep them fully resident per step.
  in_specs += [pl.BlockSpec(w.shape, lambda n: (0, 0)) for w in weights]

  out = pl.pallas_call(
      functools.partial(_effnet_fused_kernel, Ho=Ho, Wo=Wo),
      out_shape=jax.ShapeDtypeStruct((N, 1, NUM_CLASSES), jnp.float32),
      grid_spec=pltpu.PrefetchScalarGridSpec(
          num_scalar_prefetch=0,
          grid=(N,),                      # >=2 parallel steps -> both TCs on v7x
          in_specs=in_specs,
          out_specs=pl.BlockSpec((1, 1, NUM_CLASSES), lambda n: (n, 0, 0)),
          scratch_shapes=[pltpu.VMEM((Ho + 2, Wo + 2, Ce), jnp.float32)],
      ),
      compiler_params=pltpu.CompilerParams(dimension_semantics=("parallel",)),
  )(patches, *weights)

  return out.reshape(N, NUM_CLASSES)


if __name__ == "__main__":
  key = jax.random.PRNGKey(0)
  pkey, xkey = jax.random.split(key)
  params = init_params(pkey)

  # Small input consistent with the module's forward: NCHW image batch.
  x = jax.random.normal(xkey, (2, 3, 16, 16), jnp.float32)

  fwd = jax.jit(functools.partial(effnet_forward, params))
  out = jax.block_until_ready(fwd(x))
  assert out.shape == (2, NUM_CLASSES), out.shape
  assert jnp.all(jnp.isfinite(out))
  print("KERNEL_OK")
</pallas_src>

<mosaic_0001>
module attributes {stable_mosaic.version = 11 : i64} {
  func.func @_effnet_fused_kernel(%arg0: i32, %arg1: memref<1x64x27xf32, #tpu.memory_space<vmem>>, %arg2: memref<27x16xbf16, #tpu.memory_space<vmem>>, %arg3: memref<1x16xf32, #tpu.memory_space<vmem>>, %arg4: memref<16x64xbf16, #tpu.memory_space<vmem>>, %arg5: memref<1x64xf32, #tpu.memory_space<vmem>>, %arg6: memref<9x64xf32, #tpu.memory_space<vmem>>, %arg7: memref<1x64xf32, #tpu.memory_space<vmem>>, %arg8: memref<64x16xbf16, #tpu.memory_space<vmem>>, %arg9: memref<1x16xf32, #tpu.memory_space<vmem>>, %arg10: memref<16x64xbf16, #tpu.memory_space<vmem>>, %arg11: memref<1x64xf32, #tpu.memory_space<vmem>>, %arg12: memref<64x32xbf16, #tpu.memory_space<vmem>>, %arg13: memref<1x32xf32, #tpu.memory_space<vmem>>, %arg14: memref<32x64xbf16, #tpu.memory_space<vmem>>, %arg15: memref<1x64xf32, #tpu.memory_space<vmem>>, %arg16: memref<64x3xbf16, #tpu.memory_space<vmem>>, %arg17: memref<1x3xf32, #tpu.memory_space<vmem>>, %arg18: memref<1x1x3xf32, #tpu.memory_space<vmem>>, %arg19: memref<10x10x64xf32, #tpu.memory_space<vmem>>) attributes {dimension_semantics = [#tpu.dimension_semantics<parallel>], iteration_bounds = array<i64: 2>, scalar_prefetch = 0 : i64, scratch_operands = 1 : i64, tpu.core_type = #tpu.core_type<tc>, window_params = [{transform_indices = @transform_0, window_bounds = array<i64: 1, 64, 27>}, {pipeline_mode = #tpu.pipeline_mode<synchronous>, transform_indices = @transform_1, window_bounds = array<i64: 27, 16>}, {pipeline_mode = #tpu.pipeline_mode<synchronous>, transform_indices = @transform_2, window_bounds = array<i64: 1, 16>}, {pipeline_mode = #tpu.pipeline_mode<synchronous>, transform_indices = @transform_3, window_bounds = array<i64: 16, 64>}, {pipeline_mode = #tpu.pipeline_mode<synchronous>, transform_indices = @transform_4, window_bounds = array<i64: 1, 64>}, {pipeline_mode = #tpu.pipeline_mode<synchronous>, transform_indices = @transform_5, window_bounds = array<i64: 9, 64>}, {pipeline_mode = #tpu.pipeline_mode<synchronous>, transform_indices = @transform_6, window_bounds = array<i64: 1, 64>}, {pipeline_mode = #tpu.pipeline_mode<synchronous>, transform_indices = @transform_7, window_bounds = array<i64: 64, 16>}, {pipeline_mode = #tpu.pipeline_mode<synchronous>, transform_indices = @transform_8, window_bounds = array<i64: 1, 16>}, {pipeline_mode = #tpu.pipeline_mode<synchronous>, transform_indices = @transform_9, window_bounds = array<i64: 16, 64>}, {pipeline_mode = #tpu.pipeline_mode<synchronous>, transform_indices = @transform_10, window_bounds = array<i64: 1, 64>}, {pipeline_mode = #tpu.pipeline_mode<synchronous>, transform_indices = @transform_11, window_bounds = array<i64: 64, 32>}, {pipeline_mode = #tpu.pipeline_mode<synchronous>, transform_indices = @transform_12, window_bounds = array<i64: 1, 32>}, {pipeline_mode = #tpu.pipeline_mode<synchronous>, transform_indices = @transform_13, window_bounds = array<i64: 32, 64>}, {pipeline_mode = #tpu.pipeline_mode<synchronous>, transform_indices = @transform_14, window_bounds = array<i64: 1, 64>}, {pipeline_mode = #tpu.pipeline_mode<synchronous>, transform_indices = @transform_15, window_bounds = array<i64: 64, 3>}, {pipeline_mode = #tpu.pipeline_mode<synchronous>, transform_indices = @transform_16, window_bounds = array<i64: 1, 3>}, {transform_indices = @transform_17, window_bounds = array<i64: 1, 1, 3>}]} {
    %c0 = arith.constant 0 : index
    %c0_0 = arith.constant 0 : index
    %c0_1 = arith.constant 0 : index
    %0 = vector.load %arg1[%c0, %c0_0, %c0_1] : memref<1x64x27xf32, #tpu.memory_space<vmem>>, vector<1x64x27xf32>
    %1 = vector.shape_cast %0 : vector<1x64x27xf32> to vector<64x27xf32>
    %2 = arith.truncf %1 : vector<64x27xf32> to vector<64x27xbf16>
    %c0_2 = arith.constant 0 : index
    %c0_3 = arith.constant 0 : index
    %3 = vector.load %arg2[%c0_2, %c0_3] : memref<27x16xbf16, #tpu.memory_space<vmem>>, vector<27x16xbf16>
    %cst = arith.constant dense<0.000000e+00> : vector<64x16xf32>
    %4 = tpu.matmul %2, %3, %cst {dimension_numbers = #tpu.dot_dimension_numbers<[1], [0], [0], [1], [0, 0, 1, 1], [], []>} : vector<64x27xbf16>, vector<27x16xbf16>, vector<64x16xf32> -> vector<64x16xf32>
    %c0_4 = arith.constant 0 : index
    %c0_5 = arith.constant 0 : index
    %5 = vector.load %arg3[%c0_4, %c0_5] : memref<1x16xf32, #tpu.memory_space<vmem>>, vector<1x16xf32>
    %6 = vector.broadcast %5 : vector<1x16xf32> to vector<64x16xf32>
    %7 = arith.addf %4, %6 : vector<64x16xf32>
    %8 = arith.negf %7 : vector<64x16xf32>
    %9 = math.exp %8 : vector<64x16xf32>
    %cst_6 = arith.constant 1.000000e+00 : f32
    %10 = vector.broadcast %cst_6 : f32 to vector<64x16xf32>
    %11 = arith.addf %10, %9 : vector<64x16xf32>
    %12 = arith.divf %10, %11 : vector<64x16xf32>
    %13 = arith.mulf %7, %12 : vector<64x16xf32>
    %14 = arith.truncf %13 : vector<64x16xf32> to vector<64x16xbf16>
    %c0_7 = arith.constant 0 : index
    %c0_8 = arith.constant 0 : index
    %15 = vector.load %arg4[%c0_7, %c0_8] : memref<16x64xbf16, #tpu.memory_space<vmem>>, vector<16x64xbf16>
    %cst_9 = arith.constant dense<0.000000e+00> : vector<64x64xf32>
    %16 = tpu.matmul %14, %15, %cst_9 {dimension_numbers = #tpu.dot_dimension_numbers<[1], [0], [0], [1], [0, 0, 1, 1], [], []>} : vector<64x16xbf16>, vector<16x64xbf16>, vector<64x64xf32> -> vector<64x64xf32>
    %c0_10 = arith.constant 0 : index
    %c0_11 = arith.constant 0 : index
    %17 = vector.load %arg5[%c0_10, %c0_11] : memref<1x64xf32, #tpu.memory_space<vmem>>, vector<1x64xf32>
    %18 = vector.broadcast %17 : vector<1x64xf32> to vector<64x64xf32>
    %19 = arith.addf %16, %18 : vector<64x64xf32>
    %20 = arith.negf %19 : vector<64x64xf32>
    %21 = math.exp %20 : vector<64x64xf32>
    %cst_12 = arith.constant 1.000000e+00 : f32
    %22 = vector.broadcast %cst_12 : f32 to vector<64x64xf32>
    %23 = arith.addf %22, %21 : vector<64x64xf32>
    %24 = arith.divf %22, %23 : vector<64x64xf32>
    %25 = arith.mulf %19, %24 : vector<64x64xf32>
    %cst_13 = arith.constant 0.000000e+00 : f32
    %26 = vector.broadcast %cst_13 : f32 to vector<10x10x64xf32>
    %c0_14 = arith.constant 0 : index
    %c0_15 = arith.constant 0 : index
    %c0_16 = arith.constant 0 : index
    %27 = vector.load %arg19[%c0_14, %c0_15, %c0_16] : memref<10x10x64xf32, #tpu.memory_space<vmem>>, vector<10x10x64xf32>
    tpu.vector_store %arg19[%c0_14, %c0_15, %c0_16], %26 {strides = array<i32>} : memref<10x10x64xf32, #tpu.memory_space<vmem>>, vector<10x10x64xf32>,
    %28 = vector.shape_cast %25 : vector<64x64xf32> to vector<8x8x64xf32>
    %c1 = arith.constant 1 : index
    %c1_17 = arith.constant 1 : index
    %c0_18 = arith.constant 0 : index
    %29 = vector.load %arg19[%c1, %c1_17, %c0_18] : memref<10x10x64xf32, #tpu.memory_space<vmem>>, vector<8x8x64xf32>
    tpu.vector_store %arg19[%c1, %c1_17, %c0_18], %28 {strides = array<i32>} : memref<10x10x64xf32, #tpu.memory_space<vmem>>, vector<8x8x64xf32>,
    %c0_19 = arith.constant 0 : index
    %c0_20 = arith.constant 0 : index
    %c0_21 = arith.constant 0 : index
    %30 = vector.load %arg19[%c0_19, %c0_20, %c0_21] : memref<10x10x64xf32, #tpu.memory_space<vmem>>, vector<10x10x64xf32>
    %c0_22 = arith.constant 0 : index
    %c0_23 = arith.constant 0 : index
    %31 = vector.load %arg6[%c0_22, %c0_23] : memref<9x64xf32, #tpu.memory_space<vmem>>, vector<9x64xf32>
    %cst_24 = arith.constant 0.000000e+00 : f32
    %32 = vector.broadcast %cst_24 : f32 to vector<8x8x64xf32>
    %33 = vector.extract_strided_slice %30 {offsets = [0, 0, 0], sizes = [8, 8, 64], strides = [1, 1, 1]} : vector<10x10x64xf32> to vector<8x8x64xf32>
    %34 = vector.extract_strided_slice %31 {offsets = [0, 0], sizes = [1, 64], strides = [1, 1]} : vector<9x64xf32> to vector<1x64xf32>
    %35 = vector.shape_cast %34 : vector<1x64xf32> to vector<64xf32>
    %36 = vector.shape_cast %35 : vector<64xf32> to vector<1x1x64xf32>
    %37 = vector.broadcast %36 : vector<1x1x64xf32> to vector<8x8x64xf32>
    %38 = arith.mulf %33, %37 : vector<8x8x64xf32>
    %39 = arith.addf %32, %38 : vector<8x8x64xf32>
    %40 = vector.extract_strided_slice %30 {offsets = [0, 1, 0], sizes = [8, 8, 64], strides = [1, 1, 1]} : vector<10x10x64xf32> to vector<8x8x64xf32>
    %41 = vector.extract_strided_slice %31 {offsets = [1, 0], sizes = [1, 64], strides = [1, 1]} : vector<9x64xf32> to vector<1x64xf32>
    %42 = vector.shape_cast %41 : vector<1x64xf32> to vector<64xf32>
    %43 = vector.shape_cast %42 : vector<64xf32> to vector<1x1x64xf32>
    %44 = vector.broadcast %43 : vector<1x1x64xf32> to vector<8x8x64xf32>
    %45 = arith.mulf %40, %44 : vector<8x8x64xf32>
    %46 = arith.addf %39, %45 : vector<8x8x64xf32>
    %47 = vector.extract_strided_slice %30 {offsets = [0, 2, 0], sizes = [8, 8, 64], strides = [1, 1, 1]} : vector<10x10x64xf32> to vector<8x8x64xf32>
    %48 = vector.extract_strided_slice %31 {offsets = [2, 0], sizes = [1, 64], strides = [1, 1]} : vector<9x64xf32> to vector<1x64xf32>
    %49 = vector.shape_cast %48 : vector<1x64xf32> to vector<64xf32>
    %50 = vector.shape_cast %49 : vector<64xf32> to vector<1x1x64xf32>
    %51 = vector.broadcast %50 : vector<1x1x64xf32> to vector<8x8x64xf32>
    %52 = arith.mulf %47, %51 : vector<8x8x64xf32>
    %53 = arith.addf %46, %52 : vector<8x8x64xf32>
    %54 = vector.extract_strided_slice %30 {offsets = [1, 0, 0], sizes = [8, 8, 64], strides = [1, 1, 1]} : vector<10x10x64xf32> to vector<8x8x64xf32>
    %55 = vector.extract_strided_slice %31 {offsets = [3, 0], sizes = [1, 64], strides = [1, 1]} : vector<9x64xf32> to vector<1x64xf32>
    %56 = vector.shape_cast %55 : vector<1x64xf32> to vector<64xf32>
    %57 = vector.shape_cast %56 : vector<64xf32> to vector<1x1x64xf32>
    %58 = vector.broadcast %57 : vector<1x1x64xf32> to vector<8x8x64xf32>
    %59 = arith.mulf %54, %58 : vector<8x8x64xf32>
    %60 = arith.addf %53, %59 : vector<8x8x64xf32>
    %61 = vector.extract_strided_slice %30 {offsets = [1, 1, 0], sizes = [8, 8, 64], strides = [1, 1, 1]} : vector<10x10x64xf32> to vector<8x8x64xf32>
    %62 = vector.extract_strided_slice %31 {offsets = [4, 0], sizes = [1, 64], strides = [1, 1]} : vector<9x64xf32> to vector<1x64xf32>
    %63 = vector.shape_cast %62 : vector<1x64xf32> to vector<64xf32>
    %64 = vector.shape_cast %63 : vector<64xf32> to vector<1x1x64xf32>
    %65 = vector.broadcast %64 : vector<1x1x64xf32> to vector<8x8x64xf32>
    %66 = arith.mulf %61, %65 : vector<8x8x64xf32>
    %67 = arith.addf %60, %66 : vector<8x8x64xf32>
    %68 = vector.extract_strided_slice %30 {offsets = [1, 2, 0], sizes = [8, 8, 64], strides = [1, 1, 1]} : vector<10x10x64xf32> to vector<8x8x64xf32>
    %69 = vector.extract_strided_slice %31 {offsets = [5, 0], sizes = [1, 64], strides = [1, 1]} : vector<9x64xf32> to vector<1x64xf32>
    %70 = vector.shape_cast %69 : vector<1x64xf32> to vector<64xf32>
    %71 = vector.shape_cast %70 : vector<64xf32> to vector<1x1x64xf32>
    %72 = vector.broadcast %71 : vector<1x1x64xf32> to vector<8x8x64xf32>
    %73 = arith.mulf %68, %72 : vector<8x8x64xf32>
    %74 = arith.addf %67, %73 : vector<8x8x64xf32>
    %75 = vector.extract_strided_slice %30 {offsets = [2, 0, 0], sizes = [8, 8, 64], strides = [1, 1, 1]} : vector<10x10x64xf32> to vector<8x8x64xf32>
    %76 = vector.extract_strided_slice %31 {offsets = [6, 0], sizes = [1, 64], strides = [1, 1]} : vector<9x64xf32> to vector<1x64xf32>
    %77 = vector.shape_cast %76 : vector<1x64xf32> to vector<64xf32>
    %78 = vector.shape_cast %77 : vector<64xf32> to vector<1x1x64xf32>
    %79 = vector.broadcast %78 : vector<1x1x64xf32> to vector<8x8x64xf32>
    %80 = arith.mulf %75, %79 : vector<8x8x64xf32>
    %81 = arith.addf %74, %80 : vector<8x8x64xf32>
    %82 = vector.extract_strided_slice %30 {offsets = [2, 1, 0], sizes = [8, 8, 64], strides = [1, 1, 1]} : vector<10x10x64xf32> to vector<8x8x64xf32>
    %83 = vector.extract_strided_slice %31 {offsets = [7, 0], sizes = [1, 64], strides = [1, 1]} : vector<9x64xf32> to vector<1x64xf32>
    %84 = vector.shape_cast %83 : vector<1x64xf32> to vector<64xf32>
    %85 = vector.shape_cast %84 : vector<64xf32> to vector<1x1x64xf32>
    %86 = vector.broadcast %85 : vector<1x1x64xf32> to vector<8x8x64xf32>
    %87 = arith.mulf %82, %86 : vector<8x8x64xf32>
    %88 = arith.addf %81, %87 : vector<8x8x64xf32>
    %89 = vector.extract_strided_slice %30 {offsets = [2, 2, 0], sizes = [8, 8, 64], strides = [1, 1, 1]} : vector<10x10x64xf32> to vector<8x8x64xf32>
    %90 = vector.extract_strided_slice %31 {offsets = [8, 0], sizes = [1, 64], strides = [1, 1]} : vector<9x64xf32> to vector<1x64xf32>
    %91 = vector.shape_cast %90 : vector<1x64xf32> to vector<64xf32>
    %92 = vector.shape_cast %91 : vector<64xf32> to vector<1x1x64xf32>
    %93 = vector.broadcast %92 : vector<1x1x64xf32> to vector<8x8x64xf32>
    %94 = arith.mulf %89, %93 : vector<8x8x64xf32>
    %95 = arith.addf %88, %94 : vector<8x8x64xf32>
    %c0_25 = arith.constant 0 : index
    %c0_26 = arith.constant 0 : index
    %96 = vector.load %arg7[%c0_25, %c0_26] : memref<1x64xf32, #tpu.memory_space<vmem>>, vector<1x64xf32>
    %97 = vector.shape_cast %96 : vector<1x64xf32> to vector<1x1x64xf32>
    %98 = vector.broadcast %97 : vector<1x1x64xf32> to vector<8x8x64xf32>
    %99 = arith.addf %95, %98 : vector<8x8x64xf32>
    %100 = arith.negf %99 : vector<8x8x64xf32>
    %101 = math.exp %100 : vector<8x8x64xf32>
    %cst_27 = arith.constant 1.000000e+00 : f32
    %102 = vector.broadcast %cst_27 : f32 to vector<8x8x64xf32>
    %103 = arith.addf %102, %101 : vector<8x8x64xf32>
    %104 = arith.divf %102, %103 : vector<8x8x64xf32>
    %105 = arith.mulf %99, %104 : vector<8x8x64xf32>
    %106 = vector.shape_cast %105 : vector<8x8x64xf32> to vector<64x64xf32>
    %cst_28 = arith.constant dense<0.000000e+00> : vector<64xf32>
    %107 = vector.multi_reduction <add>, %106, %cst_28 [0] : vector<64x64xf32> to vector<64xf32>
    %108 = vector.shape_cast %107 : vector<64xf32> to vector<1x64xf32>
    %cst_29 = arith.constant 6.400000e+01 : f32
    %109 = vector.broadcast %cst_29 : f32 to vector<1x64xf32>
    %110 = arith.divf %108, %109 : vector<1x64xf32>
    %111 = arith.truncf %110 : vector<1x64xf32> to vector<1x64xbf16>
    %c0_30 = arith.constant 0 : index
    %c0_31 = arith.constant 0 : index
    %112 = vector.load %arg8[%c0_30, %c0_31] : memref<64x16xbf16, #tpu.memory_space<vmem>>, vector<64x16xbf16>
    %cst_32 = arith.constant dense<0.000000e+00> : vector<1x16xf32>
    %113 = tpu.matmul %111, %112, %cst_32 {dimension_numbers = #tpu.dot_dimension_numbers<[1], [0], [0], [1], [0, 0, 1, 1], [], []>} : vector<1x64xbf16>, vector<64x16xbf16>, vector<1x16xf32> -> vector<1x16xf32>
    %c0_33 = arith.constant 0 : index
    %c0_34 = arith.constant 0 : index
    %114 = vector.load %arg9[%c0_33, %c0_34] : memref<1x16xf32, #tpu.memory_space<vmem>>, vector<1x16xf32>
    %115 = arith.addf %113, %114 : vector<1x16xf32>
    %116 = arith.negf %115 : vector<1x16xf32>
    %117 = math.exp %116 : vector<1x16xf32>
    %cst_35 = arith.constant 1.000000e+00 : f32
    %118 = vector.broadcast %cst_35 : f32 to vector<1x16xf32>
    %119 = arith.addf %118, %117 : vector<1x16xf32>
    %120 = arith.divf %118, %119 : vector<1x16xf32>
    %121 = arith.mulf %115, %120 : vector<1x16xf32>
    %122 = arith.truncf %121 : vector<1x16xf32> to vector<1x16xbf16>
    %c0_36 = arith.constant 0 : index
    %c0_37 = arith.constant 0 : index
    %123 = vector.load %arg10[%c0_36, %c0_37] : memref<16x64xbf16, #tpu.memory_space<vmem>>, vector<16x64xbf16>
    %cst_38 = arith.constant dense<0.000000e+00> : vector<1x64xf32>
    %124 = tpu.matmul %122, %123, %cst_38 {dimension_numbers = #tpu.dot_dimension_numbers<[1], [0], [0], [1], [0, 0, 1, 1], [], []>} : vector<1x16xbf16>, vector<16x64xbf16>, vector<1x64xf32> -> vector<1x64xf32>
    %c0_39 = arith.constant 0 : index
    %c0_40 = arith.constant 0 : index
    %125 = vector.load %arg11[%c0_39, %c0_40] : memref<1x64xf32, #tpu.memory_space<vmem>>, vector<1x64xf32>
    %126 = arith.addf %124, %125 : vector<1x64xf32>
    %127 = arith.negf %126 : vector<1x64xf32>
    %128 = math.exp %127 : vector<1x64xf32>
    %cst_41 = arith.constant 1.000000e+00 : f32
    %129 = vector.broadcast %cst_41 : f32 to vector<1x64xf32>
    %130 = arith.addf %129, %128 : vector<1x64xf32>
    %131 = arith.divf %129, %130 : vector<1x64xf32>
    %132 = vector.broadcast %131 : vector<1x64xf32> to vector<64x64xf32>
    %133 = arith.mulf %106, %132 : vector<64x64xf32>
    %134 = arith.truncf %133 : vector<64x64xf32> to vector<64x64xbf16>
    %c0_42 = arith.constant 0 : index
    %c0_43 = arith.constant 0 : index
    %135 = vector.load %arg12[%c0_42, %c0_43] : memref<64x32xbf16, #tpu.memory_space<vmem>>, vector<64x32xbf16>
    %cst_44 = arith.constant dense<0.000000e+00> : vector<64x32xf32>
    %136 = tpu.matmul %134, %135, %cst_44 {dimension_numbers = #tpu.dot_dimension_numbers<[1], [0], [0], [1], [0, 0, 1, 1], [], []>} : vector<64x64xbf16>, vector<64x32xbf16>, vector<64x32xf32> -> vector<64x32xf32>
    %c0_45 = arith.constant 0 : index
    %c0_46 = arith.constant 0 : index
    %137 = vector.load %arg13[%c0_45, %c0_46] : memref<1x32xf32, #tpu.memory_space<vmem>>, vector<1x32xf32>
    %138 = vector.broadcast %137 : vector<1x32xf32> to vector<64x32xf32>
    %139 = arith.addf %136, %138 : vector<64x32xf32>
    %140 = arith.truncf %139 : vector<64x32xf32> to vector<64x32xbf16>
    %c0_47 = arith.constant 0 : index
    %c0_48 = arith.constant 0 : index
    %141 = vector.load %arg14[%c0_47, %c0_48] : memref<32x64xbf16, #tpu.memory_space<vmem>>, vector<32x64xbf16>
    %cst_49 = arith.constant dense<0.000000e+00> : vector<64x64xf32>
    %142 = tpu.matmul %140, %141, %cst_49 {dimension_numbers = #tpu.dot_dimension_numbers<[1], [0], [0], [1], [0, 0, 1, 1], [], []>} : vector<64x32xbf16>, vector<32x64xbf16>, vector<64x64xf32> -> vector<64x64xf32>
    %c0_50 = arith.constant 0 : index
    %c0_51 = arith.constant 0 : index
    %143 = vector.load %arg15[%c0_50, %c0_51] : memref<1x64xf32, #tpu.memory_space<vmem>>, vector<1x64xf32>
    %144 = vector.broadcast %143 : vector<1x64xf32> to vector<64x64xf32>
    %145 = arith.addf %142, %144 : vector<64x64xf32>
    %146 = arith.negf %145 : vector<64x64xf32>
    %147 = math.exp %146 : vector<64x64xf32>
    %cst_52 = arith.constant 1.000000e+00 : f32
    %148 = vector.broadcast %cst_52 : f32 to vector<64x64xf32>
    %149 = arith.addf %148, %147 : vector<64x64xf32>
    %150 = arith.divf %148, %149 : vector<64x64xf32>
    %151 = arith.mulf %145, %150 : vector<64x64xf32>
    %cst_53 = arith.constant dense<0.000000e+00> : vector<64xf32>
    %152 = vector.multi_reduction <add>, %151, %cst_53 [0] : vector<64x64xf32> to vector<64xf32>
    %153 = vector.shape_cast %152 : vector<64xf32> to vector<1x64xf32>
    %cst_54 = arith.constant 6.400000e+01 : f32
    %154 = vector.broadcast %cst_54 : f32 to vector<1x64xf32>
    %155 = arith.divf %153, %154 : vector<1x64xf32>
    %156 = arith.truncf %155 : vector<1x64xf32> to vector<1x64xbf16>
    %c0_55 = arith.constant 0 : index
    %c0_56 = arith.constant 0 : index
    %157 = vector.load %arg16[%c0_55, %c0_56] : memref<64x3xbf16, #tpu.memory_space<vmem>>, vector<64x3xbf16>
    %cst_57 = arith.constant dense<0.000000e+00> : vector<1x3xf32>
    %158 = tpu.matmul %156, %157, %cst_57 {dimension_numbers = #tpu.dot_dimension_numbers<[1], [0], [0], [1], [0, 0, 1, 1], [], []>} : vector<1x64xbf16>, vector<64x3xbf16>, vector<1x3xf32> -> vector<1x3xf32>
    %c0_58 = arith.constant 0 : index
    %c0_59 = arith.constant 0 : index
    %159 = vector.load %arg17[%c0_58, %c0_59] : memref<1x3xf32, #tpu.memory_space<vmem>>, vector<1x3xf32>
    %160 = arith.addf %158, %159 : vector<1x3xf32>
    %161 = vector.shape_cast %160 : vector<1x3xf32> to vector<1x1x3xf32>
    %c0_60 = arith.constant 0 : index
    %c0_61 = arith.constant 0 : index
    %c0_62 = arith.constant 0 : index
    %162 = vector.load %arg18[%c0_60, %c0_61, %c0_62] : memref<1x1x3xf32, #tpu.memory_space<vmem>>, vector<1x1x3xf32>
    tpu.vector_store %arg18[%c0_60, %c0_61, %c0_62], %161 {strides = array<i32>} : memref<1x1x3xf32, #tpu.memory_space<vmem>>, vector<1x1x3xf32>,
    return
  }
  func.func @transform_0(%arg0: i32) -> (i32, i32, i32) {
    %c0_i32 = arith.constant 0 : i32
    %c0_i32_0 = arith.constant 0 : i32
    %c0_i32_1 = arith.constant 0 : i32
    return %arg0, %c0_i32, %c0_i32_0 : i32, i32, i32
  }
  func.func @transform_1(%arg0: i32) -> (i32, i32) {
    %c0_i32 = arith.constant 0 : i32
    %c0_i32_0 = arith.constant 0 : i32
    %c0_i32_1 = arith.constant 0 : i32
    return %c0_i32, %c0_i32_0 : i32, i32
  }
  func.func @transform_2(%arg0: i32) -> (i32, i32) {
    %c0_i32 = arith.constant 0 : i32
    %c0_i32_0 = arith.constant 0 : i32
    %c0_i32_1 = arith.constant 0 : i32
    return %c0_i32, %c0_i32_0 : i32, i32
  }
  func.func @transform_3(%arg0: i32) -> (i32, i32) {
    %c0_i32 = arith.constant 0 : i32
    %c0_i32_0 = arith.constant 0 : i32
    %c0_i32_1 = arith.constant 0 : i32
    return %c0_i32, %c0_i32_0 : i32, i32
  }
  func.func @transform_4(%arg0: i32) -> (i32, i32) {
    %c0_i32 = arith.constant 0 : i32
    %c0_i32_0 = arith.constant 0 : i32
    %c0_i32_1 = arith.constant 0 : i32
    return %c0_i32, %c0_i32_0 : i32, i32
  }
  func.func @transform_5(%arg0: i32) -> (i32, i32) {
    %c0_i32 = arith.constant 0 : i32
    %c0_i32_0 = arith.constant 0 : i32
    %c0_i32_1 = arith.constant 0 : i32
    return %c0_i32, %c0_i32_0 : i32, i32
  }
  func.func @transform_6(%arg0: i32) -> (i32, i32) {
    %c0_i32 = arith.constant 0 : i32
    %c0_i32_0 = arith.constant 0 : i32
    %c0_i32_1 = arith.constant 0 : i32
    return %c0_i32, %c0_i32_0 : i32, i32
  }
  func.func @transform_7(%arg0: i32) -> (i32, i32) {
    %c0_i32 = arith.constant 0 : i32
    %c0_i32_0 = arith.constant 0 : i32
    %c0_i32_1 = arith.constant 0 : i32
    return %c0_i32, %c0_i32_0 : i32, i32
  }
  func.func @transform_8(%arg0: i32) -> (i32, i32) {
    %c0_i32 = arith.constant 0 : i32
    %c0_i32_0 = arith.constant 0 : i32
    %c0_i32_1 = arith.constant 0 : i32
    return %c0_i32, %c0_i32_0 : i32, i32
  }
  func.func @transform_9(%arg0: i32) -> (i32, i32) {
    %c0_i32 = arith.constant 0 : i32
    %c0_i32_0 = arith.constant 0 : i32
    %c0_i32_1 = arith.constant 0 : i32
    return %c0_i32, %c0_i32_0 : i32, i32
  }
  func.func @transform_10(%arg0: i32) -> (i32, i32) {
    %c0_i32 = arith.constant 0 : i32
    %c0_i32_0 = arith.constant 0 : i32
    %c0_i32_1 = arith.constant 0 : i32
    return %c0_i32, %c0_i32_0 : i32, i32
  }
  func.func @transform_11(%arg0: i32) -> (i32, i32) {
    %c0_i32 = arith.constant 0 : i32
    %c0_i32_0 = arith.constant 0 : i32
    %c0_i32_1 = arith.constant 0 : i32
    return %c0_i32, %c0_i32_0 : i32, i32
  }
  func.func @transform_12(%arg0: i32) -> (i32, i32) {
    %c0_i32 = arith.constant 0 : i32
    %c0_i32_0 = arith.constant 0 : i32
    %c0_i32_1 = arith.constant 0 : i32
    return %c0_i32, %c0_i32_0 : i32, i32
  }
  func.func @transform_13(%arg0: i32) -> (i32, i32) {
    %c0_i32 = arith.constant 0 : i32
    %c0_i32_0 = arith.constant 0 : i32
    %c0_i32_1 = arith.constant 0 : i32
    return %c0_i32, %c0_i32_0 : i32, i32
  }
  func.func @transform_14(%arg0: i32) -> (i32, i32) {
    %c0_i32 = arith.constant 0 : i32
    %c0_i32_0 = arith.constant 0 : i32
    %c0_i32_1 = arith.constant 0 : i32
    return %c0_i32, %c0_i32_0 : i32, i32
  }
  func.func @transform_15(%arg0: i32) -> (i32, i32) {
    %c0_i32 = arith.constant 0 : i32
    %c0_i32_0 = arith.constant 0 : i32
    %c0_i32_1 = arith.constant 0 : i32
    return %c0_i32, %c0_i32_0 : i32, i32
  }
  func.func @transform_16(%arg0: i32) -> (i32, i32) {
    %c0_i32 = arith.constant 0 : i32
    %c0_i32_0 = arith.constant 0 : i32
    %c0_i32_1 = arith.constant 0 : i32
    return %c0_i32, %c0_i32_0 : i32, i32
  }
  func.func @transform_17(%arg0: i32) -> (i32, i32, i32) {
    %c0_i32 = arith.constant 0 : i32
    %c0_i32_0 = arith.constant 0 : i32
    %c0_i32_1 = arith.constant 0 : i32
    return %arg0, %c0_i32, %c0_i32_0 : i32, i32, i32
  }
}

</mosaic_0001>

<bundles_post_ra>
// kernel: effnet_forward.1
= control target key start
LH: loop header
LB: loop body
LE: loop exit
PB: predicated region body
PF: predicated region fallthrough
CT: control target
= control target key end

     0   :  { %s3463_s0 = inlined_call_operand.vmem [shape: f32[2,64,27], index: 0, kind: input, shape index: {}]   ;;  %s3464_s1 = inlined_call_operand.vmem [shape: bf16[27,16], index: 1, kind: input, shape index: {}]   ;;  %s3465_s2 = inlined_call_operand.vmem [shape: f32[1,16], index: 2, kind: input, shape index: {}]   ;;  %s3466_s3 = inlined_call_operand.vmem [shape: bf16[16,64], index: 3, kind: input, shape index: {}]   ;;  %s3467_s4 = inlined_call_operand.vmem [shape: f32[1,64], index: 4, kind: input, shape index: {}]   ;;  %s3468_s5 = inlined_call_operand.vmem [shape: f32[9,64], index: 5, kind: input, shape index: {}]   ;;  %s3469_s6 = inlined_call_operand.vmem [shape: f32[1,64], index: 6, kind: input, shape index: {}]   ;;  %s3470_s7 = inlined_call_operand.vmem [shape: bf16[64,16], index: 7, kind: input, shape index: {}]   ;;  %s3471_s8 = inlined_call_operand.vmem [shape: f32[1,16], index: 8, kind: input, shape index: {}]   ;;  %s3472_s9 = inlined_call_operand.vmem [shape: bf16[16,64], index: 9, kind: input, shape index: {}]   ;;  %s3473_s10 = inlined_call_operand.vmem [shape: f32[1,64], index: 10, kind: input, shape index: {}]   ;;  %s3474_s11 = inlined_call_operand.vmem [shape: bf16[64,32], index: 11, kind: input, shape index: {}]   ;;  %s3475_s12 = inlined_call_operand.vmem [shape: f32[1,32], index: 12, kind: input, shape index: {}]   ;;  %s3476_s13 = inlined_call_operand.vmem [shape: bf16[32,64], index: 13, kind: input, shape index: {}]   ;;  %s3477_s14 = inlined_call_operand.vmem [shape: f32[1,64], index: 14, kind: input, shape index: {}]   ;;  %s3478_s15 = inlined_call_operand.vmem [shape: bf16[64,3], index: 15, kind: input, shape index: {}]   ;;  %s3479_s16 = inlined_call_operand.vmem [shape: f32[1,3], index: 16, kind: input, shape index: {}]   ;;  %s3480_s17 = inlined_call_operand.hbm [shape: f32[2,1,3], index: 17, kind: output, shape index: {}]  }
   0x1   :  { %3493 = sst [smem:[#allocation14_spill]] %s3463_s0 }
   0x2   :  { %3494 = sst [smem:[#allocation15_spill]] %s3464_s1 }
   0x3   :  { %3495 = sst [smem:[#allocation16_spill]] %s3465_s2 }
   0x4   :  { %3496 = sst [smem:[#allocation17_spill]] %s3466_s3 }
   0x5   :  { %22 = vsyncpa [#allocation4], 0 }
   0x6   :  { %24 = vsyncpa [#allocation4 + $0x1], 0  ;;  %s2702_s24 = smov 0   ;;  %s2704_s25 = smov 0  }
   0x7   :  { %s2706_s26 = smov 0   ;;  %s2708_s27 = smov 0  }
   0x8 LB: > { %3497 = sst [smem:[#allocation6_spill]] %s2602_s26  ;;  %s2723_s28 = sadd.s32 4294967295, %s2606_s27   ;;  %s2606_s27 = sphi %s2708_s27, %s3528_s27   ;;  %s2602_s26 = sphi %s2706_s26, %s3530_s26   ;;  %s2598_s25 = sphi %s2704_s25, %s3532_s25   ;;  %s2594_s24 = sphi %s2702_s24, %s3531_s24  }
   0x9   : > { %s2144_s29 = sadd.s32 4294967294, %s2606_s27   ;;  %s2727_s0 = sadd.s32 1, %s2606_s27  }
   0xa   : > { %3498 = sst [smem:[#allocation7_spill]] %s2727_s0  ;;  %s399_s30 = sadd.s32 1, %s2602_s26 }
   0xb   : > { %s396_s18 = ssub.s32 %s2606_s27, %s2727_s0  ;;  %p409_p0 = scmp.ne.s32.totalorder %s2602_s26, %s2598_s25 }
   0xc   : > { %p397_p1 = scmp.eq.s32.totalorder %s396_s18, 0  ;;  %p410_p2 = scmp.eq.s32.totalorder %s2723_s28, 1 }
   0xd   : > { %p415_p3 = scmp.ne.s32.totalorder %s2598_s25, %s2594_s24  ;;  %p416_p4 = scmp.eq.s32.totalorder %s2144_s29, 1 }
   0xe   : > { %s2738_s19 = scalar_select %p397_p1, %s2602_s26, %s399_s30  }
   0xf   : > { %p2740_p5 = por %p410_p2, %p409_p0  ;;  %p2744_p6 = por %p416_p4, %p415_p3 }
  0x10   : > { %3499 = sst [smem:[#allocation8_spill]] %s2738_s19  ;;  %p2147_p7 = scmp.ge.s32.totalorder %s2606_s27, 1 }
  0x11   : > { %p490_p8 = scmp.lt.s32.totalorder %s2606_s27, 3 }
  0x13   : > { %p491_p9 = pnand %p2147_p7, %p490_p8 }
  0x15   : > { %494 = sbr.rel (%p491_p9) target bundleno = 1894 (0x766), region = 88 }
  0x1c   : > { %s3502_s23 = sld [smem:[#allocation15_spill]]  ;;  %vm594_vm0 = vcmask 1044480   ;;  %vm595_vm1 = vcmask 1045504   ;;  %p541_p10 = scmp.lt.s32.totalorder %s2723_s28, 1  ;;  %v2608_v2 = vmov 65535   ;;  %vm581_vm2 = vcmask 220160  }
  0x1d   : > { %v596_v3 = vsel %vm594_vm0, 4294967295, %v2608_v2  ;;  %s3503_s26 = sld [smem:[#allocation14_spill]]  ;;  %s3504_s3 = sld [smem:[#allocation17_spill]]  ;;  %vm741_vm3 = vcmask 130048   ;;  %vm875_vm4 = vcmask 523264   ;;  %vm877_vm5 = vcmask 517120  }
  0x1e   : > { %v597_v4 = vsel %vm595_vm1, %v596_v3, 0  ;;  %s542_s18 = scalar_select %p541_p10, %s2723_s28, 1  ;;  %vm2610_vm6 = vmmov 0   ;;  %vm984_vm7 = vcmask 1046528   ;;  %vm1841_vm8 = vcmask 261120  }
  0x1f   : > { %s3505_s2 = sld [smem:[#allocation16_spill]]  ;;  %vm2074_vm9 = vcmask 16384  }
  0x20   : > { %s2230_s19 = sshll.u32 %s542_s18, 6  ;;  %s2227_s18 = sshll.u32 %s2723_s28, 4 }
  0x22   : > { %v2390_v0 = vld [vmem:[%s3502_s23] sm:$0xff]   ;;  %v2391_v1 = vld [vmem:[%s3502_s23 + $0x8] sm:$0x3f]  }
  0x23   : > { %2268 = vmatprep.subr.bf16.mxu0 %v2390_v0  ;;  %v599_v5 = vand.u32 %v2391_v1, %v597_v4  ;;  %s545_s0 = scalar_lea.vmem %s3503_s26, %s2230_s19  ;;  %v2392_v18 = vld [vmem:[%s3504_s3] sm:$0xff]   ;;  %s539_s19 = sand.u32 1, %s2598_s25  }
  0x24   : > { %2269 = vmatpush3.bf16.msra.mxu0 %v2390_v0  ;;  %v547_v6 = vld [vmem:[%s545_s0] sm:$0xff]  ;;  %v548_v7 = vld [vmem:[%s545_s0 + $0x8] sm:$0xff]  ;;  %v549_v8 = vld [vmem:[%s545_s0 + $0x10] sm:$0xff]  ;;  %2280 = vmatprep.subr.bf16.mxu1 %v2392_v18  ;;  %s540_s21 = scalar_lea.vmem [#allocation3], %s539_s19  ;;  %s2077_s28 = scalar_lea.sflag [#allocation4], %s539_s19 }
  0x25   : > { %2270 = vmatprep.subr.bf16.mxu0 %v599_v5  ;;  %v555_v9 = vpack.c.bf16 %v548_v7, %v547_v6  ;;  %v550_v10 = vld [vmem:[%s545_s0 + $0x18] sm:$0xff]  ;;  %v551_v11 = vld [vmem:[%s545_s0 + $0x20] sm:$0xff]  ;;  %v552_v12 = vld [vmem:[%s545_s0 + $0x28] sm:$0xff]  ;;  %2281 = vmatpush3.bf16.msra.mxu1 %v2392_v18  ;;  %s2089_s22 = sshll.u32 %s540_s21, 4  ;;  %s3423_s22 = int_to_ptr.vmem [resolvable:$true] %s2089_s22 }
  0x26   : > { %v556_v13 = vpack.c.bf16 %v550_v10, %v549_v8  ;;  %v557_v14 = vpack.c.bf16 %v552_v12, %v551_v11  ;;  %v553_v15 = vld [vmem:[%s545_s0 + $0x30] sm:$0xff]  ;;  %v554_v16 = vld [vmem:[%s545_s0 + $0x38] sm:$0xff]  ;;  %v2150_v19 = vld [vmem:[%s3505_s2] ss:$0 sm:$0xff]  ;;  %s3421_s2 = scalar_lea.hbm %s3480_s17, %s2227_s18  ;;  %s2544_s30 = scalar_lea.vmem %s3423_s22, 16 }
  0x27   : > { %2272 = vmatprep.mubr.msk.bf16.mxu0 %vm581_vm2, %v555_v9  ;;  %v558_v17 = vpack.c.bf16 %v554_v16, %v553_v15  ;;  %v3485_v16 = vmov 0.0   ;;  %v2394_v18 = vld [vmem:[%s3470_s7 + $0x8] sm:$0xff]   ;;  %p2545_p11 = scmp.ne.s32.totalorder %s3423_s22, %s2544_s30  ;;  %s2611_s0 = smov [#allocation3]  }
  0x28   : > { %2271 = vmatpush3.bf16.msra.mxu0 %v599_v5  ;;  %878 = vst.msk [vmem:[#allocation2 + $0x8] sm:$0x3] %vm877_vm5, %v3485_v16  ;;  %884 = vst.msk [vmem:[#allocation2 + $0x38] sm:$0x3] %vm877_vm5, %v3485_v16  ;;  %2290 = vmatprep.subr.bf16.mxu1 %v3485_v16  ;;  %s2548_s3 = sshll.u32 %s2611_s0, 4  ;;  %s2549_s3 = int_to_ptr.vmem [resolvable:$false] %s2548_s3 }
  0x29   : > { %883 = vst.msk [vmem:[#allocation2 + $0x30] sm:$0xff] %vm875_vm4, %v3485_v16  ;;  %876 = vst.msk [vmem:[#allocation2] sm:$0xff] %vm875_vm4, %v3485_v16  ;;  %2302 = vmatprep.subr.bf16.mxu0 %v3485_v16  ;;  %p2546_p12 = pnand %p2545_p11, %p2740_p5  ;;  %s2550_s29 = scalar_lea.vmem %s2549_s3, 32 }
  0x2a   : > { %896 = vst.msk [vmem:[#allocation2 + $0x98] sm:$0x3] %vm877_vm5, %v3485_v16  ;;  %880 = vst.msk [vmem:[#allocation2 + $0x18] sm:$0x3] %vm877_vm5, %v3485_v16  ;;  %p2551_p0 = scmp.lt.s32.totalorder %s3423_s22, %s2549_s3  ;;  %p2552_p1 = scmp.lt.s32.totalorder %s2550_s29, %s2544_s30 }
  0x2b   : > { %2273 = vmatmul.mubr.msk.bf16.vlgmr.msra.gmra.mrb[0].mxu0 %vm581_vm2, %v556_v13  ;;  %879 = vst.msk [vmem:[#allocation2 + $0x10] sm:$0xff] %vm875_vm4, %v3485_v16  ;;  %881 = vst.msk [vmem:[#allocation2 + $0x20] sm:$0xff] %vm875_vm4, %v3485_v16  ;;  %p2547_p13 = pneg %p2546_p12 }
  0x2c   : > { %2276 = vmatprep.mubr.msk.bf16.mxu0 %vm581_vm2, %v557_v14  ;;  %882 = vst.msk [vmem:[#allocation2 + $0x28] sm:$0x3] %vm877_vm5, %v3485_v16  ;;  %886 = vst.msk [vmem:[#allocation2 + $0x48] sm:$0x3] %vm877_vm5, %v3485_v16  ;;  %p2553_p2 = por %p2552_p1, %p2551_p0 }
  0x2d   : > { %885 = vst.msk [vmem:[#allocation2 + $0x40] sm:$0xff] %vm875_vm4, %v3485_v16  ;;  %887 = vst.msk [vmem:[#allocation2 + $0x50] sm:$0xff] %vm875_vm4, %v3485_v16 }
  0x2e   : > { %888 = vst.msk [vmem:[#allocation2 + $0x58] sm:$0x3] %vm877_vm5, %v3485_v16  ;;  %890 = vst.msk [vmem:[#allocation2 + $0x68] sm:$0x3] %vm877_vm5, %v3485_v16  ;;  %p2554_p3 = pnand %p2553_p2, %p2547_p13 }
  0x2f   : > { %889 = vst.msk [vmem:[#allocation2 + $0x60] sm:$0xff] %vm875_vm4, %v3485_v16  ;;  %891 = vst.msk [vmem:[#allocation2 + $0x70] sm:$0xff] %vm875_vm4, %v3485_v16 }
  0x30   : > { %892 = vst.msk [vmem:[#allocation2 + $0x78] sm:$0x3] %vm877_vm5, %v3485_v16  ;;  %894 = vst.msk [vmem:[#allocation2 + $0x88] sm:$0x3] %vm877_vm5, %v3485_v16 }
  0x31   : > { %893 = vst.msk [vmem:[#allocation2 + $0x80] sm:$0xff] %vm875_vm4, %v3485_v16  ;;  %895 = vst.msk [vmem:[#allocation2 + $0x90] sm:$0xff] %vm875_vm4, %v3485_v16 }
  0x33   : > { %2277 = vmatmul.mubr.msk.bf16.gmra.mrb[4].mxu0 %vm581_vm2, %v558_v17  ;;  %v2393_v17 = vld [vmem:[%s3470_s7] sm:$0xff]  }
  0x34   : > { %2304 = vmatprep.mubr.msk.bf16.mxu0 %vm2610_vm6, %v3485_v16 }
  0xfe   : > { %v2274_v20 = vpop.f32.mrb[0].mxu0 }
  0xff   : > { %v644_v21 = vadd.f32 %v2274_v20, %v2150_v19  ;;  %v635_v22 = vpop.f32.mrb[1].mxu0  ;;  %v2396_v20 = vld [vmem:[%s3470_s7 + $0x18] sm:$0xff]  }
 0x100   : > { %v636_v23 = vadd.f32 %v2150_v19, %v635_v22  ;;  %v2275_v24 = vpop.f32.mrb[2].mxu0 }
 0x101   : > { %v2159_v25 = vmul.f32 -1.442695, %v644_v21  ;;  %v647_v26 = vadd.f32 %v2275_v24, %v2150_v19  ;;  %v638_v27 = vpop.f32.mrb[3].mxu0 }
 0x102   : > { %v2157_v28 = vmul.f32 -1.442695, %v636_v23  ;;  %v639_v29 = vadd.f32 %v2150_v19, %v638_v27 }
 0x103   : > { %2408 = vpow2.f32 %v2159_v25  ;;  %v2160_v30 = vmul.f32 -1.442695, %v647_v26 }
 0x104   : > { %2410 = vpow2.f32 %v2157_v28  ;;  %v2158_v31 = vmul.f32 -1.442695, %v639_v29 }
 0x105   : > { %2412 = vpow2.f32 %v2160_v30  ;;  %v928_v30 = vlaneseq }
 0x106   : > { %2414 = vpow2.f32 %v2158_v31  ;;  %v2278_v32 = vpop.f32.mrb[4].mxu0 }
 0x107   : > { %v660_v33 = vadd.f32 %v2278_v32, %v2150_v19  ;;  %v651_v34 = vpop.f32.mrb[5].mxu0 }
 0x108   : > { %v652_v35 = vadd.f32 %v2150_v19, %v651_v34  ;;  %v2279_v36 = vpop.f32.mrb[6].mxu0 }
 0x109   : > { %v2163_v37 = vmul.f32 -1.442695, %v660_v33  ;;  %v663_v38 = vadd.f32 %v2279_v36, %v2150_v19  ;;  %v654_v39 = vpop.f32.mrb[7].mxu0 }
 0x10a   : > { %v2161_v40 = vmul.f32 -1.442695, %v652_v35  ;;  %v655_v41 = vadd.f32 %v2150_v19, %v654_v39  ;;  %v2395_v19 = vld [vmem:[%s3470_s7 + $0x10] sm:$0xff]  }
 0x10b   : > { %2416 = vpow2.f32 %v2163_v37  ;;  %v2164_v42 = vmul.f32 -1.442695, %v663_v38 }
 0x10c   : > { %2418 = vpow2.f32 %v2161_v40  ;;  %v2162_v43 = vmul.f32 -1.442695, %v655_v41 }
 0x10d   : > { %v2409_v44 = vpop.eup %2408  ;;  %2420 = vpow2.f32 %v2164_v42 }
 0x10e   : > { %v2411_v45 = vpop.eup %2410  ;;  %v692_v46 = vadd.f32 1.0, %v2409_v44  ;;  %2422 = vpow2.f32 %v2162_v43 }
 0x10f   : > { %v2413_v47 = vpop.eup %2412  ;;  %v690_v48 = vadd.f32 1.0, %v2411_v45 }
 0x110   : > { %v2415_v49 = vpop.eup %2414  ;;  %2424 = vrcp.f32 %v692_v46  ;;  %v693_v50 = vadd.f32 1.0, %v2413_v47  ;;  %v2864_v47 = vld [vmem:[%s3468_s5] sm:$0xff] }
 0x111   : > { %2426 = vrcp.f32 %v690_v48  ;;  %v691_v51 = vadd.f32 1.0, %v2415_v49 }
 0x112   : > { %2428 = vrcp.f32 %v693_v50 }
 0x113   : > { %2430 = vrcp.f32 %v691_v51 }
 0x115   : > { %v2417_v52 = vpop.eup %2416 }
 0x116   : > { %v2419_v53 = vpop.eup %2418  ;;  %v696_v54 = vadd.f32 1.0, %v2417_v52 }
 0x117   : > { %v2421_v55 = vpop.eup %2420  ;;  %v694_v56 = vadd.f32 1.0, %v2419_v53 }
 0x118   : > { %v2423_v57 = vpop.eup %2422  ;;  %2432 = vrcp.f32 %v696_v54  ;;  %v697_v58 = vadd.f32 1.0, %v2421_v55 }
 0x119   : > { %2434 = vrcp.f32 %v694_v56  ;;  %v695_v59 = vadd.f32 1.0, %v2423_v57  ;;  %v906_v57 = vld [vmem:[#allocation2] sm:$0xff] }
 0x11a   : > { %v2425_v60 = vpop.eup %2424  ;;  %2436 = vrcp.f32 %v697_v58  ;;  %v907_v58 = vld [vmem:[#allocation2 + $0x8] sm:$0x3] }
 0x11b   : > { %v2427_v61 = vpop.eup %2426  ;;  %2438 = vrcp.f32 %v695_v59  ;;  %v716_v0 = vmul.f32 %v2425_v60, %v644_v21  ;;  %v2165_v21 = vld [vmem:[%s3467_s4] ss:$0 sm:$0xff] }
 0x11c   : > { %v2429_v62 = vpop.eup %2428  ;;  %v714_v2 = vmul.f32 %v2427_v61, %v636_v23 }
 0x11d   : > { %v2431_v63 = vpop.eup %2430  ;;  %v717_v1 = vmul.f32 %v2429_v62, %v647_v26 }
 0x11e   : > { %v715_v3 = vmul.f32 %v2431_v63, %v639_v29 }
 0x11f   : > { %v723_v4 = vpack.c.bf16 %v717_v1, %v716_v0 }
 0x120   : > { %v722_v5 = vpack.c.bf16 %v715_v3, %v714_v2 }
 0x122   : > { %v2433_v6 = vpop.eup %2432  ;;  %2282 = vmatprep.mubr.msk.bf16.mxu1 %vm741_vm3, %v722_v5 }
 0x123   : > { %v2435_v7 = vpop.eup %2434  ;;  %2283 = vmatmul.mubr.msk.bf16.vlgmr.msra.gmra.mrb[0].mxu1 %vm741_vm3, %v723_v4  ;;  %v720_v10 = vmul.f32 %v2433_v6, %v660_v33 }
 0x124   : > { %v2437_v8 = vpop.eup %2436  ;;  %v718_v12 = vmul.f32 %v2435_v7, %v652_v35  ;;  %2291 = vmatpush3.bf16.msra.mxu1 %v2393_v17  ;;  %v2848_v35 = vshrl.u32 %v928_v30, 7 }
 0x125   : > { %v2439_v9 = vpop.eup %2438  ;;  %v721_v11 = vmul.f32 %v2437_v8, %v663_v38  ;;  %2292 = vmatprep.subr.bf16.mxu1 %v3485_v16 }
 0x126   : > { %v719_v13 = vmul.f32 %v2439_v9, %v655_v41  ;;  %3506 = vst [vmem:[#allocation9_spill] sm:$0xff] %v2848_v35  ;;  %v950_v44 = vsub.s32 1, %v2848_v35  ;;  %v1027_v55 = vsub.s32 2, %v2848_v35  ;;  %v3487_v62 = vsub.s32 0, %v2848_v35 }
 0x127   : > { %v725_v14 = vpack.c.bf16 %v721_v11, %v720_v10  ;;  %v1295_v3 = vsub.s32 7, %v2848_v35 }
 0x128   : > { %v724_v15 = vpack.c.bf16 %v719_v13, %v718_v12  ;;  %2293 = vmatpush3.bf16.msra.mxu1 %v2394_v18  ;;  %v2869_v53 = vrot.slane %v2864_v47, %v950_v44  ;;  %v2876_v1 = vrot.slane %v2864_v47, %v1027_v55  ;;  %v2882_v5 = vrot.slane %v2864_v47, %v3487_v62  ;;  %v924_v13 = vld [vmem:[#allocation2 + $0x90] sm:$0xff] }
 0x129   : > { %2294 = vmatprep.subr.bf16.mxu1 %v3485_v16  ;;  %v2887_v17 = vrot.slane %v2864_v47, %v1295_v3 }
 0x12a   : > { %2286 = vmatprep.mubr.msk.bf16.mxu1 %vm741_vm3, %v724_v15  ;;  %v952_v63 = vmul.f32 %v2869_v53, %v906_v57  ;;  %v953_v0 = vmul.f32 %v2869_v53, %v907_v58  ;;  %v1029_v10 = vmul.f32 %v2876_v1, %v906_v57  ;;  %v1030_v11 = vmul.f32 %v2876_v1, %v907_v58  ;;  %v925_v15 = vld [vmem:[#allocation2 + $0x98] sm:$0x3] }
 0x12b   : > { %2287 = vmatmul.mubr.msk.bf16.gmra.mrb[4].mxu1 %vm741_vm3, %v725_v14 }
 0x12c   : > { %2298 = vmatprep.mubr.msk.bf16.mxu1 %vm2610_vm6, %v3485_v16  ;;  %2295 = vmatpush3.bf16.msra.mxu1 %v2395_v19  ;;  %v985_v7 = vrot.slane %v952_v63, 1  ;;  %v986_v8 = vrot.slane %v953_v0, 1  ;;  %v932_v19 = vmul.f32 %v2882_v5, %v906_v57 }
 0x12d   : > { %2296 = vmatprep.subr.bf16.mxu1 %v3485_v16 }
 0x130   : > { %2297 = vmatpush3.bf16.msra.mxu1 %v2396_v20  ;;  %v987_v20 = vsel %vm984_vm7, %v985_v7, %v986_v8 }
 0x1f6   : > { %v2284_v22 = vpop.f32.mrb[0].mxu1 }
 0x1f7   : > { %v2836_v23 = vadd.f32 %v2284_v22, %v2165_v21  ;;  %v788_v24 = vpop.f32.mrb[1].mxu1 }
 0x1f8   : > { %v2838_v25 = vadd.f32 %v2165_v21, %v788_v24  ;;  %v2285_v26 = vpop.f32.mrb[2].mxu1  ;;  %v2895_v24 = vld [vmem:[%s3468_s5 + $0x8] ss:$0 sm:$0xff] }
 0x1f9   : > { %v2173_v27 = vmul.f32 -1.442695, %v2836_v23  ;;  %v2841_v28 = vadd.f32 %v2285_v26, %v2165_v21  ;;  %v791_v29 = vpop.f32.mrb[3].mxu1  ;;  %3507 = vst [vmem:[#allocation10_spill] sm:$0xff] %v2895_v24  ;;  %v1061_v26 = vrot.slane %v1029_v10, 2 }
 0x1fa   : > { %v2171_v31 = vmul.f32 -1.442695, %v2838_v25  ;;  %v2844_v32 = vadd.f32 %v2165_v21, %v791_v29  ;;  %v1311_v29 = vmul.f32 %v2887_v17, %v924_v13 }
 0x1fb   : > { %2440 = vpow2.f32 %v2173_v27  ;;  %v2174_v33 = vmul.f32 -1.442695, %v2841_v28  ;;  %v1062_v27 = vrot.slane %v1030_v11, 2 }
 0x1fc   : > { %2442 = vpow2.f32 %v2171_v31  ;;  %v2172_v34 = vmul.f32 -1.442695, %v2844_v32 }
 0x1fd   : > { %2444 = vpow2.f32 %v2174_v33  ;;  %v1312_v33 = vmul.f32 %v2887_v17, %v925_v15 }
 0x1fe   : > { %2446 = vpow2.f32 %v2172_v34  ;;  %v2288_v36 = vpop.f32.mrb[4].mxu1  ;;  %v1387_v34 = vmul.f32 %v2895_v24, %v924_v13 }
 0x1ff   : > { %v2850_v37 = vadd.f32 %v2288_v36, %v2165_v21  ;;  %v804_v38 = vpop.f32.mrb[5].mxu1  ;;  %v1388_v36 = vmul.f32 %v2895_v24, %v925_v15 }
 0x200   : > { %v2852_v39 = vadd.f32 %v2165_v21, %v804_v38  ;;  %v2289_v40 = vpop.f32.mrb[6].mxu1 }
 0x201   : > { %v2177_v41 = vmul.f32 -1.442695, %v2850_v37  ;;  %v2855_v42 = vadd.f32 %v2289_v40, %v2165_v21  ;;  %v807_v43 = vpop.f32.mrb[7].mxu1  ;;  %v1199_v40 = vsub.s32 5, %v2848_v35 }
 0x202   : > { %v2175_v45 = vmul.f32 -1.442695, %v2852_v39  ;;  %v2859_v46 = vadd.f32 %v2165_v21, %v807_v43  ;;  %v1275_v43 = vsub.s32 6, %v2848_v35 }
 0x203   : > { %2448 = vpow2.f32 %v2177_v41  ;;  %v2178_v48 = vmul.f32 -1.442695, %v2855_v42 }
 0x204   : > { %2450 = vpow2.f32 %v2175_v45  ;;  %v2176_v49 = vmul.f32 -1.442695, %v2859_v46 }
 0x205   : > { %v2441_v50 = vpop.eup %2440  ;;  %2452 = vpow2.f32 %v2178_v48  ;;  %v1017_v48 = vadd.f32 %v987_v20, %v932_v19 }
 0x206   : > { %v2443_v51 = vpop.eup %2442  ;;  %v845_v52 = vadd.f32 1.0, %v2441_v50  ;;  %2454 = vpow2.f32 %v2176_v49  ;;  %v1063_v49 = vsel %vm595_vm1, %v1061_v26, %v1062_v27  ;;  %v1350_v50 = vrot.slane %v1311_v29, 1 }
 0x207   : > { %v2445_v54 = vpop.eup %2444  ;;  %v843_v56 = vadd.f32 1.0, %v2443_v51 }
 0x208   : > { %v2447_v59 = vpop.eup %2446  ;;  %2456 = vrcp.f32 %v845_v52  ;;  %v846_v60 = vadd.f32 1.0, %v2445_v54  ;;  %v1351_v52 = vrot.slane %v1312_v33, 1  ;;  %v1427_v54 = vrot.slane %v1388_v36, 2 }
 0x209   : > { %2458 = vrcp.f32 %v843_v56  ;;  %v844_v61 = vadd.f32 1.0, %v2447_v59  ;;  %v2917_v56 = vrot.slane %v2864_v47, %v1199_v40 }
 0x20a   : > { %2460 = vrcp.f32 %v846_v60  ;;  %v2935_v3 = vsel %vm984_vm7, %v1350_v50, %v1351_v52 }
 0x20b   : > { %2462 = vrcp.f32 %v844_v61  ;;  %v2926_v61 = vadd.f32 %v1063_v49, %v1017_v48  ;;  %3509 = vst [vmem:[#allocation12_spill] sm:$0xff] %v2935_v3 }
 0x20d   : > { %v2449_v2 = vpop.eup %2448 }
 0x20e   : > { %v2451_v4 = vpop.eup %2450  ;;  %v849_v6 = vadd.f32 1.0, %v2449_v2 }
 0x20f   : > { %v847_v9 = vadd.f32 1.0, %v2451_v4  ;;  %v2453_v12 = vpop.eup %2452 }
 0x210   : > { %2464 = vrcp.f32 %v849_v6  ;;  %v2455_v14 = vpop.eup %2454  ;;  %v850_v45 = vadd.f32 1.0, %v2453_v12 }
 0x211   : > { %2466 = vrcp.f32 %v847_v9  ;;  %v848_v51 = vadd.f32 1.0, %v2455_v14 }
 0x212   : > { %v2457_v18 = vpop.eup %2456  ;;  %2468 = vrcp.f32 %v850_v45 }
 0x213   : > { %v2459_v21 = vpop.eup %2458  ;;  %v869_v22 = vmul.f32 %v2457_v18, %v2836_v23  ;;  %v1123_v23 = vsub.s32 4, %v2848_v35  ;;  %2470 = vrcp.f32 %v848_v51 }
 0x214   : > { %v2461_v30 = vpop.eup %2460  ;;  %v867_v31 = vmul.f32 %v2459_v21, %v2838_v25  ;;  %v1103_v25 = vsub.s32 3, %v2848_v35 }
 0x215   : > { %v2463_v38 = vpop.eup %2462  ;;  %900 = vst.msk [vmem:[#allocation2 + $0x31] sm:$0xff] %vm875_vm4, %v869_v22  ;;  %v870_v41 = vmul.f32 %v2461_v30, %v2841_v28  ;;  %v1426_v28 = vrot.slane %v1387_v34, 2  ;;  %v2914_v55 = vrot.slane %v2864_v47, %v1123_v23 }
 0x216   : > { %898 = vst.msk [vmem:[#allocation2 + $0x11] sm:$0xff] %vm875_vm4, %v867_v31  ;;  %v868_v44 = vmul.f32 %v2463_v38, %v2844_v32  ;;  %v2920_v32 = vrot.slane %v2864_v47, %v1275_v43  ;;  %v2923_v58 = vrot.slane %v2864_v47, %v1103_v25 }
 0x217   : > { %901 = vst.msk [vmem:[#allocation2 + $0x41] sm:$0xff] %vm875_vm4, %v870_v41  ;;  %v2938_v47 = vsel %vm595_vm1, %v1426_v28, %v1427_v54 }
 0x218   : > { %899 = vst.msk [vmem:[#allocation2 + $0x21] sm:$0xff] %vm875_vm4, %v868_v44  ;;  %v2929_v63 = vmul.f32 %v2920_v32, %v924_v13  ;;  %3510 = vst [vmem:[#allocation13_spill] sm:$0xff] %v2938_v47 }
 0x21a   : > { %v2465_v57 = vpop.eup %2464 }
 0x21b   : > { %v2467_v59 = vpop.eup %2466  ;;  %v873_v60 = vmul.f32 %v2465_v57, %v2850_v37 }
 0x21c   : > { %v2931_v0 = vld [vmem:[#allocation2 + $0x38] sm:$0x3]  ;;  %v871_v2 = vmul.f32 %v2467_v59, %v2852_v39  ;;  %v2469_v50 = vpop.eup %2468 }
 0x21d   : > { %3508 = vst [vmem:[#allocation11_spill] sm:$0xff] %v2931_v0  ;;  %v2942_v37 = vmul.f32 %v2869_v53, %v2931_v0  ;;  %v2946_v4 = vmul.f32 %v2876_v1, %v2931_v0  ;;  %v2950_v6 = vmul.f32 %v2914_v55, %v2931_v0  ;;  %v2954_v39 = vmul.f32 %v2917_v56, %v2931_v0  ;;  %v908_v7 = vld [vmem:[#allocation2 + $0x10] sm:$0xff]  ;;  %v909_v8 = vld [vmem:[#allocation2 + $0x18] sm:$0x3]  ;;  %v2471_v59 = vpop.eup %2470 }
 0x21e   : > { %904 = vst.msk [vmem:[#allocation2 + $0x71] sm:$0xff] %vm875_vm4, %v873_v60  ;;  %v933_v9 = vmul.f32 %v2882_v5, %v908_v7  ;;  %v954_v10 = vmul.f32 %v2869_v53, %v908_v7  ;;  %v955_v11 = vmul.f32 %v2869_v53, %v909_v8  ;;  %v1031_v12 = vmul.f32 %v2876_v1, %v908_v7  ;;  %v2966_v19 = vld [vmem:[#allocation2 + $0x48] sm:$0x3]  ;;  %v3008_v60 = vld [vmem:[#allocation2 + $0x30] sm:$0xff] }
 0x21f   : > { %902 = vst.msk [vmem:[#allocation2 + $0x51] sm:$0xff] %vm875_vm4, %v871_v2  ;;  %v1032_v22 = vmul.f32 %v2876_v1, %v909_v8  ;;  %v2970_v27 = vmul.f32 %v2923_v58, %v908_v7  ;;  %v1125_v29 = vmul.f32 %v2914_v55, %v908_v7  ;;  %v1126_v30 = vmul.f32 %v2914_v55, %v909_v8  ;;  %v2985_v23 = vld [vmem:[#allocation2 + $0x28] sm:$0x3] }
 0x220   : > { %v988_v20 = vrot.slane %v954_v10, 1  ;;  %v989_v21 = vrot.slane %v955_v11, 1  ;;  %v1064_v26 = vrot.slane %v1031_v12, 2  ;;  %v2975_v31 = vmul.f32 %v2917_v56, %v908_v7  ;;  %v3011_v7 = vld [vmem:[#allocation2 + $0x20] sm:$0xff] }
 0x221   : > { %v1065_v34 = vrot.slane %v1032_v22, 2  ;;  %v2979_v36 = vmul.f32 %v2917_v56, %v909_v8  ;;  %v2983_v38 = vmul.f32 %v2869_v53, %v2966_v19  ;;  %v1157_v41 = vrot.slane %v1125_v29, 1  ;;  %v3025_v11 = vld [vmem:[#allocation2 + $0x40] sm:$0xff] }
 0x222   : > { %v990_v33 = vsel %vm984_vm7, %v988_v20, %v989_v21  ;;  %v1158_v43 = vrot.slane %v1126_v30, 1  ;;  %v2993_v49 = vmul.f32 %v2876_v1, %v2966_v19  ;;  %v3002_v28 = vmul.f32 %v2914_v55, %v2966_v19 }
 0x223   : > { %v1018_v40 = vadd.f32 %v990_v33, %v933_v9  ;;  %v1066_v44 = vsel %vm595_vm1, %v1064_v26, %v1065_v34  ;;  %v998_v48 = vrot.slane %v2983_v38, 1  ;;  %v957_v54 = vmul.f32 %v2869_v53, %v2985_v23 }
 0x224   : > { %v2998_v52 = vsel %vm984_vm7, %v1157_v41, %v1158_v43  ;;  %v3015_v8 = vmul.f32 %v2876_v1, %v2985_v23  ;;  %v3019_v9 = vmul.f32 %v2914_v55, %v2985_v23  ;;  %v3023_v10 = vmul.f32 %v2917_v56, %v2985_v23 }
 0x225   : > { %v2995_v51 = vadd.f32 %v1066_v44, %v1018_v40  ;;  %v992_v20 = vrot.slane %v957_v54, 1  ;;  %v3028_v21 = vld [vmem:[#allocation2 + $0x70] sm:$0xff]  ;;  %v874_v38 = vmul.f32 %v2469_v50, %v2855_v42  ;;  %v3042_v40 = vld [vmem:[#allocation2 + $0x78] sm:$0x3]  ;;  %v872_v44 = vmul.f32 %v2471_v59, %v2859_v46 }
 0x226   : > { %v3006_v57 = vld [vmem:[#allocation2 + $0x58] sm:$0x3]  ;;  %v3030_v22 = vld [vmem:[#allocation2 + $0x50] sm:$0xff]  ;;  %v1068_v30 = vrot.slane %v3015_v8, 2  ;;  %v934_v54 = vmul.f32 %v2882_v5, %v3011_v7  ;;  %v935_v8 = vmul.f32 %v2882_v5, %v3008_v60  ;;  %v936_v16 = vmul.f32 %v2882_v5, %v3025_v11 }
 0x227   : > { %v963_v26 = vmul.f32 %v2869_v53, %v3006_v57  ;;  %v3036_v29 = vmul.f32 %v2876_v1, %v3006_v57  ;;  %905 = vst.msk [vmem:[#allocation2 + $0x81] sm:$0xff] %vm875_vm4, %v874_v38  ;;  %v937_v42 = vmul.f32 %v2882_v5, %v3030_v22  ;;  %v939_v50 = vmul.f32 %v2882_v5, %v3028_v21 }
 0x228   : > { %903 = vst.msk [vmem:[#allocation2 + $0x61] sm:$0xff] %vm875_vm4, %v872_v44  ;;  %v956_v46 = vmul.f32 %v2869_v53, %v3011_v7  ;;  %v958_v59 = vmul.f32 %v2869_v53, %v3008_v60  ;;  %v966_v38 = vmul.f32 %v2869_v53, %v3028_v21  ;;  %v967_v62 = vmul.f32 %v2869_v53, %v3042_v40 }
 0x229   : > { %v1001_v41 = vrot.slane %v963_v26, 1  ;;  %v1077_v43 = vrot.slane %v3036_v29, 2  ;;  %v960_v26 = vmul.f32 %v2869_v53, %v3025_v11  ;;  %v962_v29 = vmul.f32 %v2869_v53, %v3030_v22 }
 0x22a   : > { %v1033_v44 = vmul.f32 %v2876_v1, %v3011_v7  ;;  %v1035_v18 = vmul.f32 %v2876_v1, %v3008_v60  ;;  %v991_v34 = vrot.slane %v956_v46, 1  ;;  %v994_v25 = vrot.slane %v958_v59, 1 }
 0x22b   : > { %v997_v45 = vrot.slane %v960_v26, 1  ;;  %v1000_v12 = vrot.slane %v962_v29, 1  ;;  %v1006_v15 = vrot.slane %v966_v38, 1  ;;  %v1007_v33 = vrot.slane %v967_v62, 1 }
 0x22c   : > { %v1037_v2 = vmul.f32 %v2876_v1, %v3025_v11  ;;  %v1039_v14 = vmul.f32 %v2876_v1, %v3030_v22  ;;  %v993_v13 = vsel %vm984_vm7, %v991_v34, %v992_v20  ;;  %v3511_v35 = vrot.slane %v2942_v37, 1 }
 0x22d   : > { %v999_v24 = vsel %vm984_vm7, %v997_v45, %v998_v48  ;;  %v1002_v46 = vsel %vm984_vm7, %v1000_v12, %v1001_v41  ;;  %v1008_v59 = vsel %vm984_vm7, %v1006_v15, %v1007_v33  ;;  %v1019_v26 = vadd.f32 %v993_v13, %v934_v54 }
 0x22e   : > { %v996_v47 = vsel %vm984_vm7, %v994_v25, %v3511_v35  ;;  %v1021_v29 = vadd.f32 %v999_v24, %v936_v16  ;;  %v1022_v38 = vadd.f32 %v1002_v46, %v937_v42  ;;  %v1024_v3 = vadd.f32 %v1008_v59, %v939_v50  ;;  %v3112_v59 = vld [vmem:[#allocation2 + $0x80] sm:$0xff] }
 0x22f   : > { %v1020_v62 = vadd.f32 %v996_v47, %v935_v8  ;;  %v1043_v0 = vmul.f32 %v2876_v1, %v3028_v21  ;;  %v1044_v20 = vmul.f32 %v2876_v1, %v3042_v40  ;;  %v3089_v37 = vld [vmem:[#allocation2 + $0x60] sm:$0xff]  ;;  %v3091_v35 = vld [vmem:[#allocation2 + $0x68] sm:$0x3]  ;;  %v1067_v25 = vrot.slane %v1033_v44, 2 }
 0x230   : > { %v1070_v45 = vrot.slane %v1035_v18, 2  ;;  %v1073_v48 = vrot.slane %v1037_v2, 2  ;;  %v1106_v13 = vmul.f32 %v2923_v58, %v3011_v7  ;;  %v965_v16 = vmul.f32 %v2869_v53, %v3091_v35 }
 0x231   : > { %v938_v24 = vmul.f32 %v2882_v5, %v3089_v37  ;;  %v964_v47 = vmul.f32 %v2869_v53, %v3089_v37  ;;  %v1041_v15 = vmul.f32 %v2876_v1, %v3089_v37  ;;  %v1042_v12 = vmul.f32 %v2876_v1, %v3091_v35 }
 0x232   : > { %v1069_v18 = vsel %vm595_vm1, %v1067_v25, %v1068_v30  ;;  %v3512_v2 = vrot.slane %v2946_v4, 2  ;;  %v3513_v34 = vrot.slane %v2993_v49, 2  ;;  %v1004_v5 = vrot.slane %v965_v16, 1 }
 0x233   : > { %v1003_v54 = vrot.slane %v964_v47, 1  ;;  %v1076_v8 = vrot.slane %v1039_v14, 2  ;;  %v1079_v53 = vrot.slane %v1041_v15, 2  ;;  %v1080_v42 = vrot.slane %v1042_v12, 2  ;;  %v3133_v12 = vld [vmem:[#allocation2 + $0x88] sm:$0x3] }
 0x234   : > { %v1072_v33 = vsel %vm595_vm1, %v1070_v45, %v3512_v2  ;;  %v1075_v41 = vsel %vm595_vm1, %v1073_v48, %v3513_v34  ;;  %v1082_v50 = vrot.slane %v1043_v0, 2  ;;  %v1083_v44 = vrot.slane %v1044_v20, 2 }
 0x235   : > { %v1095_v46 = vadd.f32 %v1069_v18, %v1019_v26  ;;  %v1005_v1 = vsel %vm984_vm7, %v1003_v54, %v1004_v5  ;;  %v1078_v4 = vsel %vm595_vm1, %v1076_v8, %v1077_v43  ;;  %v1096_v30 = vadd.f32 %v1072_v33, %v1020_v62 }
 0x236   : > { %v1097_v25 = vadd.f32 %v1075_v41, %v1021_v29  ;;  %v1023_v45 = vadd.f32 %v1005_v1, %v938_v24  ;;  %v1081_v49 = vsel %vm595_vm1, %v1079_v53, %v1080_v42  ;;  %v1084_v48 = vsel %vm595_vm1, %v1082_v50, %v1083_v44 }
 0x237   : > { %v1098_v16 = vadd.f32 %v1078_v4, %v1022_v38  ;;  %v1100_v14 = vadd.f32 %v1084_v48, %v1024_v3  ;;  %v1107_v0 = vmul.f32 %v2923_v58, %v3008_v60  ;;  %v1108_v26 = vmul.f32 %v2923_v58, %v3025_v11 }
 0x238   : > { %v1109_v20 = vmul.f32 %v2923_v58, %v3030_v22  ;;  %v1099_v47 = vadd.f32 %v1081_v49, %v1023_v45  ;;  %v1110_v43 = vmul.f32 %v2923_v58, %v3089_v37  ;;  %v1111_v62 = vmul.f32 %v2923_v58, %v3028_v21 }
 0x239   : > { %v1112_v29 = vmul.f32 %v2923_v58, %v3112_v59  ;;  %v1113_v3 = vadd.f32 %v2970_v27, %v2926_v61  ;;  %v1114_v38 = vadd.f32 %v1106_v13, %v2995_v51  ;;  %v1115_v24 = vadd.f32 %v1107_v0, %v1095_v46 }
 0x23a   : > { %v1116_v15 = vadd.f32 %v1108_v26, %v1096_v30  ;;  %v1117_v18 = vadd.f32 %v1109_v20, %v1097_v25  ;;  %v1118_v2 = vadd.f32 %v1110_v43, %v1098_v16  ;;  %v1119_v33 = vadd.f32 %v1111_v62, %v1099_v47 }
 0x23b   : > { %v1120_v34 = vadd.f32 %v1112_v29, %v1100_v14  ;;  %v1127_v41 = vmul.f32 %v2914_v55, %v3011_v7  ;;  %v1129_v5 = vmul.f32 %v2914_v55, %v3008_v60  ;;  %v1131_v58 = vmul.f32 %v2914_v55, %v3025_v11 }
 0x23c   : > { %v1133_v61 = vmul.f32 %v2914_v55, %v3030_v22  ;;  %v1134_v27 = vmul.f32 %v2914_v55, %v3006_v57  ;;  %v1135_v51 = vmul.f32 %v2914_v55, %v3089_v37  ;;  %v1136_v13 = vmul.f32 %v2914_v55, %v3091_v35 }
 0x23d   : > { %v1137_v54 = vmul.f32 %v2914_v55, %v3028_v21  ;;  %v1138_v8 = vmul.f32 %v2914_v55, %v3042_v40  ;;  %v1139_v53 = vmul.f32 %v2914_v55, %v3112_v59  ;;  %v1140_v42 = vmul.f32 %v2914_v55, %v3133_v12 }
 0x23e   : > { %v1160_v50 = vrot.slane %v1127_v41, 1  ;;  %v1163_v44 = vrot.slane %v1129_v5, 1  ;;  %v1166_v46 = vrot.slane %v1131_v58, 1  ;;  %v1169_v1 = vrot.slane %v1133_v61, 1 }
 0x23f   : > { %v1170_v4 = vrot.slane %v1134_v27, 1  ;;  %v3514_v30 = vrot.slane %v3019_v9, 1  ;;  %v1172_v45 = vrot.slane %v1135_v51, 1  ;;  %v1173_v49 = vrot.slane %v1136_v13, 1 }
 0x240   : > { %v1175_v48 = vrot.slane %v1137_v54, 1  ;;  %v3515_v16 = vrot.slane %v2950_v6, 1  ;;  %v3516_v0 = vrot.slane %v3002_v28, 1  ;;  %v1176_v20 = vrot.slane %v1138_v8, 1 }
 0x241   : > { %v1162_v25 = vsel %vm984_vm7, %v1160_v50, %v3514_v30  ;;  %v1171_v26 = vsel %vm984_vm7, %v1169_v1, %v1170_v4  ;;  %v1174_v47 = vsel %vm984_vm7, %v1172_v45, %v1173_v49  ;;  %v1178_v43 = vrot.slane %v1139_v53, 1 }
 0x242   : > { %v1165_v14 = vsel %vm984_vm7, %v1163_v44, %v3515_v16  ;;  %v1168_v55 = vsel %vm984_vm7, %v1166_v46, %v3516_v0  ;;  %v1179_v9 = vrot.slane %v1140_v42, 1  ;;  %v1189_v62 = vadd.f32 %v2998_v52, %v1113_v3 }
 0x243   : > { %v1177_v29 = vsel %vm984_vm7, %v1175_v48, %v1176_v20  ;;  %v1190_v41 = vadd.f32 %v1162_v25, %v1114_v38  ;;  %v1191_v5 = vadd.f32 %v1165_v14, %v1115_v24  ;;  %v1192_v6 = vadd.f32 %v1168_v55, %v1116_v15 }
 0x244   : > { %v1180_v58 = vsel %vm984_vm7, %v1178_v43, %v1179_v9  ;;  %v1193_v61 = vadd.f32 %v1171_v26, %v1117_v18  ;;  %v1194_v28 = vadd.f32 %v1174_v47, %v1118_v2  ;;  %v1195_v27 = vadd.f32 %v1177_v29, %v1119_v33 }
 0x245   : > { %v1196_v51 = vadd.f32 %v1180_v58, %v1120_v34  ;;  %v1203_v13 = vmul.f32 %v2917_v56, %v3011_v7  ;;  %v1205_v54 = vmul.f32 %v2917_v56, %v3008_v60  ;;  %v1207_v52 = vmul.f32 %v2917_v56, %v3025_v11 }
 0x246   : > { %v1208_v3 = vmul.f32 %v2917_v56, %v2966_v19  ;;  %v1209_v38 = vmul.f32 %v2917_v56, %v3030_v22  ;;  %v1210_v24 = vmul.f32 %v2917_v56, %v3006_v57  ;;  %v1211_v15 = vmul.f32 %v2917_v56, %v3089_v37 }
 0x247   : > { %v1212_v18 = vmul.f32 %v2917_v56, %v3091_v35  ;;  %v1213_v2 = vmul.f32 %v2917_v56, %v3028_v21  ;;  %v1214_v33 = vmul.f32 %v2917_v56, %v3042_v40  ;;  %v1215_v34 = vmul.f32 %v2917_v56, %v3112_v59 }
 0x248   : > { %v1216_v8 = vmul.f32 %v2917_v56, %v3133_v12  ;;  %v3517_v53 = vrot.slane %v2979_v36, 2  ;;  %v3518_v42 = vrot.slane %v2975_v31, 2  ;;  %v1236_v44 = vrot.slane %v1203_v13, 2 }
 0x249   : > { %v1239_v46 = vrot.slane %v1205_v54, 2  ;;  %v1242_v1 = vrot.slane %v1207_v52, 2  ;;  %v1243_v4 = vrot.slane %v1208_v3, 2  ;;  %v1245_v30 = vrot.slane %v1209_v38, 2 }
 0x24a   : > { %v1235_v50 = vsel %vm595_vm1, %v3518_v42, %v3517_v53  ;;  %v1246_v25 = vrot.slane %v1210_v24, 2  ;;  %v3519_v45 = vrot.slane %v3023_v10, 2  ;;  %v3520_v48 = vrot.slane %v2954_v39, 2 }
 0x24b   : > { %v1248_v16 = vrot.slane %v1211_v15, 2  ;;  %v1249_v36 = vrot.slane %v1212_v18, 2  ;;  %v1244_v31 = vsel %vm595_vm1, %v1242_v1, %v1243_v4  ;;  %v1251_v0 = vrot.slane %v1213_v2, 2 }
 0x24c   : > { %v1238_v49 = vsel %vm595_vm1, %v1236_v44, %v3519_v45  ;;  %v1241_v56 = vsel %vm595_vm1, %v1239_v46, %v3520_v48  ;;  %v1247_v14 = vsel %vm595_vm1, %v1245_v30, %v1246_v25  ;;  %v1252_v55 = vrot.slane %v1214_v33, 2 }
 0x24d   : > { %v1250_v26 = vsel %vm595_vm1, %v1248_v16, %v1249_v36  ;;  %v1254_v20 = vrot.slane %v1215_v34, 2  ;;  %v1255_v47 = vrot.slane %v1216_v8, 2  ;;  %v1265_v43 = vadd.f32 %v1235_v50, %v1189_v62  ;;  %v3521_v50 = vld [vmem:[#allocation11_spill] sm:$0xff] }
 0x24e   : > { %v1253_v10 = vsel %vm595_vm1, %v1251_v0, %v1252_v55  ;;  %v1266_v9 = vadd.f32 %v1238_v49, %v1190_v41  ;;  %v1267_v29 = vadd.f32 %v1241_v56, %v1191_v5  ;;  %v1268_v39 = vadd.f32 %v1244_v31, %v1192_v6 }
 0x24f   : > { %v1256_v58 = vsel %vm595_vm1, %v1254_v20, %v1255_v47  ;;  %v1269_v13 = vadd.f32 %v1247_v14, %v1193_v61  ;;  %v1270_v54 = vadd.f32 %v1250_v26, %v1194_v28  ;;  %v1271_v52 = vadd.f32 %v1253_v10, %v1195_v27 }
 0x250   : > { %v1272_v3 = vadd.f32 %v1256_v58, %v1196_v51  ;;  %v1277_v38 = vmul.f32 %v2920_v32, %v3011_v7  ;;  %v1278_v24 = vmul.f32 %v2920_v32, %v3008_v60  ;;  %v1279_v62 = vmul.f32 %v2920_v32, %v3025_v11 }
 0x251   : > { %v1280_v41 = vmul.f32 %v2920_v32, %v3030_v22  ;;  %v1281_v5 = vmul.f32 %v2920_v32, %v3089_v37  ;;  %v1282_v6 = vmul.f32 %v2920_v32, %v3028_v21  ;;  %v1283_v61 = vmul.f32 %v2920_v32, %v3112_v59 }
 0x252   : > { %v1285_v28 = vadd.f32 %v1277_v38, %v1265_v43  ;;  %v1286_v27 = vadd.f32 %v1278_v24, %v1266_v9  ;;  %v1287_v51 = vadd.f32 %v1279_v62, %v1267_v29  ;;  %v1292_v15 = vadd.f32 %v2929_v63, %v1272_v3 }
 0x253   : > { %v1288_v18 = vadd.f32 %v1280_v41, %v1268_v39  ;;  %v1289_v2 = vadd.f32 %v1281_v5, %v1269_v13  ;;  %v1290_v33 = vadd.f32 %v1282_v6, %v1270_v54  ;;  %v1291_v34 = vadd.f32 %v1283_v61, %v1271_v52 }
 0x254   : > { %v1297_v8 = vmul.f32 %v2887_v17, %v3011_v7  ;;  %v1298_v53 = vmul.f32 %v2887_v17, %v2985_v23  ;;  %v1299_v42 = vmul.f32 %v2887_v17, %v3008_v60  ;;  %v1300_v32 = vmul.f32 %v2887_v17, %v3521_v50 }
 0x255   : > { %v1301_v44 = vmul.f32 %v2887_v17, %v3025_v11  ;;  %v1302_v63 = vmul.f32 %v2887_v17, %v2966_v19  ;;  %v1303_v46 = vmul.f32 %v2887_v17, %v3030_v22  ;;  %v1304_v1 = vmul.f32 %v2887_v17, %v3006_v57 }
 0x256   : > { %v1305_v4 = vmul.f32 %v2887_v17, %v3089_v37  ;;  %v1306_v30 = vmul.f32 %v2887_v17, %v3091_v35  ;;  %v1307_v25 = vmul.f32 %v2887_v17, %v3028_v21  ;;  %v1308_v45 = vmul.f32 %v2887_v17, %v3042_v40 }
 0x257   : > { %v1309_v49 = vmul.f32 %v2887_v17, %v3112_v59  ;;  %v1310_v48 = vmul.f32 %v2887_v17, %v3133_v12  ;;  %v1329_v56 = vrot.slane %v1297_v8, 1  ;;  %v1330_v16 = vrot.slane %v1298_v53, 1  ;;  %v3522_v8 = vld [vmem:[#allocation12_spill] sm:$0xff] }
 0x258   : > { %v1332_v36 = vrot.slane %v1299_v42, 1  ;;  %v1333_v31 = vrot.slane %v1300_v32, 1  ;;  %v1335_v14 = vrot.slane %v1301_v44, 1  ;;  %v1336_v0 = vrot.slane %v1302_v63, 1  ;;  %v3523_v42 = vld [vmem:[#allocation10_spill] sm:$0xff] }
 0x259   : > { %v1331_v55 = vsel %vm984_vm7, %v1329_v56, %v1330_v16  ;;  %v1338_v26 = vrot.slane %v1303_v46, 1  ;;  %v1339_v20 = vrot.slane %v1304_v1, 1  ;;  %v1341_v47 = vrot.slane %v1305_v4, 1  ;;  %v2180_v56 = vld [vmem:[%s3469_s6] ss:$0 sm:$0xff] }
 0x25a   : > { %v1334_v43 = vsel %vm984_vm7, %v1332_v36, %v1333_v31  ;;  %v1337_v10 = vsel %vm984_vm7, %v1335_v14, %v1336_v0  ;;  %v1342_v9 = vrot.slane %v1306_v30, 1  ;;  %v1344_v29 = vrot.slane %v1307_v25, 1 }
 0x25b   : > { %v1340_v39 = vsel %vm984_vm7, %v1338_v26, %v1339_v20  ;;  %v1345_v17 = vrot.slane %v1308_v45, 1  ;;  %v1347_v58 = vrot.slane %v1309_v49, 1  ;;  %v1348_v13 = vrot.slane %v1310_v48, 1 }
 0x25c   : > { %v1343_v54 = vsel %vm984_vm7, %v1341_v47, %v1342_v9  ;;  %v1361_v52 = vadd.f32 %v1331_v55, %v1285_v28  ;;  %v1362_v3 = vadd.f32 %v1334_v43, %v1286_v27  ;;  %v1363_v38 = vadd.f32 %v1337_v10, %v1287_v51  ;;  %v3524_v43 = vld [vmem:[#allocation13_spill] sm:$0xff] }
 0x25d   : > { %v1346_v24 = vsel %vm984_vm7, %v1344_v29, %v1345_v17  ;;  %v1349_v62 = vsel %vm984_vm7, %v1347_v58, %v1348_v13  ;;  %v1364_v41 = vadd.f32 %v1340_v39, %v1288_v18  ;;  %v1365_v5 = vadd.f32 %v1343_v54, %v1289_v2 }
 0x25e   : > { %v1366_v6 = vadd.f32 %v1346_v24, %v1290_v33  ;;  %v1367_v61 = vadd.f32 %v1349_v62, %v1291_v34  ;;  %v1368_v53 = vadd.f32 %v3522_v8, %v1292_v15  ;;  %v1373_v32 = vmul.f32 %v3523_v42, %v3011_v7 }
 0x25f   : > { %v1374_v44 = vmul.f32 %v3523_v42, %v2985_v23  ;;  %v1375_v28 = vmul.f32 %v3523_v42, %v3008_v60  ;;  %v1376_v27 = vmul.f32 %v3523_v42, %v3521_v50  ;;  %v1377_v51 = vmul.f32 %v3523_v42, %v3025_v11 }
 0x260   : > { %v1378_v18 = vmul.f32 %v3523_v42, %v2966_v19  ;;  %v1379_v15 = vmul.f32 %v3523_v42, %v3030_v22  ;;  %v1380_v7 = vmul.f32 %v3523_v42, %v3006_v57  ;;  %v1381_v23 = vmul.f32 %v3523_v42, %v3089_v37 }
 0x261   : > { %v1382_v60 = vmul.f32 %v3523_v42, %v3091_v35  ;;  %v1383_v2 = vmul.f32 %v3523_v42, %v3028_v21  ;;  %v1384_v11 = vmul.f32 %v3523_v42, %v3042_v40  ;;  %v1385_v19 = vmul.f32 %v3523_v42, %v3112_v59 }
 0x262   : > { %v1386_v22 = vmul.f32 %v3523_v42, %v3133_v12  ;;  %v1405_v33 = vrot.slane %v1373_v32, 2  ;;  %v1406_v57 = vrot.slane %v1374_v44, 2  ;;  %v1408_v34 = vrot.slane %v1375_v28, 2 }
 0x263   : > { %v1409_v50 = vrot.slane %v1376_v27, 2  ;;  %v1411_v37 = vrot.slane %v1377_v51, 2  ;;  %v1412_v63 = vrot.slane %v1378_v18, 2  ;;  %v1414_v46 = vrot.slane %v1379_v15, 2 }
 0x264   : > { %v1407_v35 = vsel %vm595_vm1, %v1405_v33, %v1406_v57  ;;  %v1415_v1 = vrot.slane %v1380_v7, 2  ;;  %v1417_v21 = vrot.slane %v1381_v23, 2  ;;  %v1418_v4 = vrot.slane %v1382_v60, 2 }
 0x265   : > { %v1410_v40 = vsel %vm595_vm1, %v1408_v34, %v1409_v50  ;;  %v1413_v30 = vsel %vm595_vm1, %v1411_v37, %v1412_v63  ;;  %v1420_v59 = vrot.slane %v1383_v2, 2  ;;  %v1421_v25 = vrot.slane %v1384_v11, 2 }
 0x266   : > { %v1416_v12 = vsel %vm595_vm1, %v1414_v46, %v1415_v1  ;;  %v1419_v45 = vsel %vm595_vm1, %v1417_v21, %v1418_v4  ;;  %v1423_v49 = vrot.slane %v1385_v19, 2  ;;  %v1424_v48 = vrot.slane %v1386_v22, 2 }
 0x267   : > { %v1422_v16 = vsel %vm595_vm1, %v1420_v59, %v1421_v25  ;;  %v1437_v36 = vadd.f32 %v1407_v35, %v1361_v52  ;;  %v1438_v31 = vadd.f32 %v1410_v40, %v1362_v3  ;;  %v1439_v14 = vadd.f32 %v1413_v30, %v1363_v38 }
 0x268   : > { %v1425_v0 = vsel %vm595_vm1, %v1423_v49, %v1424_v48  ;;  %v1440_v55 = vadd.f32 %v1416_v12, %v1364_v41  ;;  %v1441_v26 = vadd.f32 %v1419_v45, %v1365_v5  ;;  %v1442_v20 = vadd.f32 %v1422_v16, %v1366_v6 }
 0x269   : > { %v1443_v47 = vadd.f32 %v1425_v0, %v1367_v61  ;;  %v1444_v10 = vadd.f32 %v3524_v43, %v1368_v53  ;;  %v1452_v9 = vadd.f32 %v2180_v56, %v1437_v36  ;;  %v1453_v29 = vadd.f32 %v2180_v56, %v1438_v31 }
 0x26a   : > { %v1454_v39 = vadd.f32 %v2180_v56, %v1439_v14  ;;  %v1455_v17 = vadd.f32 %v2180_v56, %v1440_v55  ;;  %v1456_v58 = vadd.f32 %v2180_v56, %v1441_v26  ;;  %v1457_v13 = vadd.f32 %v2180_v56, %v1442_v20 }
 0x26b   : > { %v1458_v54 = vadd.f32 %v2180_v56, %v1443_v47  ;;  %v2181_v24 = vmul.f32 -1.442695, %v1452_v9  ;;  %v2182_v62 = vmul.f32 -1.442695, %v1453_v29  ;;  %v3301_v52 = vadd.f32 %v2180_v56, %v1444_v10 }
 0x26c   : > { %v2183_v3 = vmul.f32 -1.442695, %v1454_v39  ;;  %v2184_v38 = vmul.f32 -1.442695, %v1455_v17  ;;  %v2185_v41 = vmul.f32 -1.442695, %v1456_v58 }
 0x26d   : > { %2472 = vpow2.f32 %v2181_v24  ;;  %v2186_v5 = vmul.f32 -1.442695, %v1457_v13  ;;  %v2187_v6 = vmul.f32 -1.442695, %v1458_v54  ;;  %v2188_v61 = vmul.f32 -1.442695, %v3301_v52 }
 0x26e   : > { %2474 = vpow2.f32 %v2182_v62  ;;  %v2397_v24 = vld [vmem:[%s3472_s9] sm:$0xff]  }
 0x26f   : > { %2476 = vpow2.f32 %v2183_v3  ;;  %2303 = vmatpush3.bf16.msra.mxu0 %v2397_v24  ;;  %v1548_v62 = vld [vmem:[%s3471_s8] sm:$0x1] }
 0x270   : > { %2478 = vpow2.f32 %v2184_v38 }
 0x271   : > { %2480 = vpow2.f32 %v2185_v41 }
 0x272   : > { %2482 = vpow2.f32 %v2186_v5 }
 0x273   : > { %2484 = vpow2.f32 %v2187_v6 }
 0x274   : > { %2486 = vpow2.f32 %v2188_v61 }
 0x277   : > { %v2473_v8 = vpop.eup %2472 }
 0x278   : > { %v2475_v53 = vpop.eup %2474  ;;  %v1484_v42 = vadd.f32 1.0, %v2473_v8 }
 0x279   : > { %v2477_v32 = vpop.eup %2476  ;;  %v1485_v44 = vadd.f32 1.0, %v2475_v53 }
 0x27a   : > { %v2479_v28 = vpop.eup %2478  ;;  %v1486_v27 = vadd.f32 1.0, %v2477_v32  ;;  %2488 = vrcp.f32 %v1484_v42 }
 0x27b   : > { %v2481_v51 = vpop.eup %2480  ;;  %v1487_v18 = vadd.f32 1.0, %v2479_v28  ;;  %2490 = vrcp.f32 %v1485_v44  ;;  %v2398_v44 = vld [vmem:[%s3474_s11] sm:$0xff]   ;;  %v2399_v28 = vld [vmem:[%s3474_s11 + $0x8] sm:$0xff]  }
 0x27c   : > { %v2483_v15 = vpop.eup %2482  ;;  %v1488_v7 = vadd.f32 1.0, %v2481_v51  ;;  %2492 = vrcp.f32 %v1486_v27  ;;  %2308 = vmatprep.subr.bf16.mxu1 %v2398_v44  ;;  %v2400_v27 = vld [vmem:[%s3474_s11 + $0x10] sm:$0xff]   ;;  %v2401_v51 = vld [vmem:[%s3474_s11 + $0x18] sm:$0xff]  }
 0x27d   : > { %v2485_v23 = vpop.eup %2484  ;;  %v1489_v60 = vadd.f32 1.0, %v2483_v15  ;;  %2494 = vrcp.f32 %v1487_v18  ;;  %v1626_v18 = vld [vmem:[%s3473_s10] sm:$0x1] }
 0x27e   : > { %v2487_v2 = vpop.eup %2486  ;;  %v1490_v11 = vadd.f32 1.0, %v2485_v23  ;;  %2496 = vrcp.f32 %v1488_v7 }
 0x27f   : > { %v1491_v19 = vadd.f32 1.0, %v2487_v2  ;;  %2498 = vrcp.f32 %v1489_v60 }
 0x280   : > { %2500 = vrcp.f32 %v1490_v11 }
 0x281   : > { %2502 = vrcp.f32 %v1491_v19 }
 0x284   : > { %v2489_v22 = vpop.eup %2488 }
 0x285   : > { %v2491_v33 = vpop.eup %2490  ;;  %v3304_v57 = vmul.f32 %v2489_v22, %v1452_v9 }
 0x286   : > { %v2493_v34 = vpop.eup %2492  ;;  %v3306_v50 = vmul.f32 %v2491_v33, %v1453_v29 }
 0x287   : > { %v2495_v37 = vpop.eup %2494  ;;  %v3308_v63 = vmul.f32 %v2493_v34, %v1454_v39  ;;  %v1516_v1 = vsel %vm875_vm4, %v3304_v57, 0.0  ;;  %v3525_v34 = vld [vmem:[#allocation9_spill] sm:$0xff] }
 0x288   : > { %v2497_v46 = vpop.eup %2496  ;;  %v3310_v35 = vmul.f32 %v2495_v37, %v1455_v17  ;;  %v1517_v21 = vsel %vm875_vm4, %v3306_v50, 0.0  ;;  %v3526_v37 = vsub.s32 0, %v3525_v34 }
 0x289   : > { %v2499_v4 = vpop.eup %2498  ;;  %v1518_v40 = vadd.f32 %v1517_v21, %v1516_v1  ;;  %v1519_v30 = vsel %vm875_vm4, %v3308_v63, 0.0  ;;  %v3318_v25 = vmul.f32 %v2497_v46, %v1456_v58 }
 0x28a   : > { %v2501_v59 = vpop.eup %2500  ;;  %v3320_v12 = vmul.f32 %v2499_v4, %v1457_v13  ;;  %v1521_v48 = vsel %vm875_vm4, %v3310_v35, 0.0 }
 0x28b   : > { %v1520_v45 = vadd.f32 %v1519_v30, %v1518_v40  ;;  %v3322_v49 = vmul.f32 %v2501_v59, %v1458_v54  ;;  %v2503_v56 = vpop.eup %2502  ;;  %v1523_v36 = vsel %vm875_vm4, %v3318_v25, 0.0 }
 0x28c   : > { %v1525_v31 = vsel %vm875_vm4, %v3320_v12, 0.0  ;;  %v3331_v0 = vmul.f32 %v2503_v56, %v3301_v52 }
 0x28d   : > { %v1522_v16 = vadd.f32 %v1521_v48, %v1520_v45  ;;  %v1527_v55 = vsel %vm875_vm4, %v3322_v49, 0.0 }
 0x28e   : > { %v1529_v47 = vsel %vm875_vm4, %v3331_v0, 0.0 }
 0x28f   : > { %v1524_v14 = vadd.f32 %v1523_v36, %v1522_v16  ;;  %v2198_v16 = vld [vmem:[%s3475_s12] ss:$0 sm:$0xff] }
 0x291   : > { %v1526_v26 = vadd.f32 %v1525_v31, %v1524_v14 }
 0x293   : > { %v1528_v20 = vadd.f32 %v1527_v55, %v1526_v26 }
 0x295   : > { %v1530_v43 = vadd.f32 %v1529_v47, %v1528_v20 }
 0x297   : > { %v1531_v10 = vrot.slane %v1530_v43, 4 }
 0x299   : > { %v1532_v9 = vadd.f32 %v1531_v10, %v1530_v43 }
 0x29b   : > { %v1533_v29 = vrot.slane %v1532_v9, 2 }
 0x29d   : > { %v1534_v39 = vadd.f32 %v1533_v29, %v1532_v9 }
 0x29f   : > { %v1535_v17 = vrot.slane %v1534_v39, 1 }
 0x2a1   : > { %v1536_v58 = vadd.f32 %v1535_v17, %v1534_v39 }
 0x2a3   : > { %v1538_v13 = vmul.f32 0.015625, %v1536_v58 }
 0x2a5   : > { %v1539_v54 = vpack.c.bf16 %v1538_v13, %v1538_v13 }
 0x2a7   : > { %2299 = vmatmul.mubr.msk.bf16.vlgmr.msra.gmra.mrb[8].mxu1 %vm875_vm4, %v1539_v54 }
 0x2a8   : > { %2309 = vmatpush3.bf16.msra.mxu1 %v2398_v44 }
 0x2a9   : > { %2310 = vmatprep.subr.bf16.mxu1 %v2399_v28 }
 0x2ac   : > { %2311 = vmatpush3.bf16.msra.mxu1 %v2399_v28 }
 0x2ad   : > { %2312 = vmatprep.subr.bf16.mxu1 %v2400_v27 }
 0x2b0   : > { %2313 = vmatpush3.bf16.msra.mxu1 %v2400_v27 }
 0x2b1   : > { %2314 = vmatprep.subr.bf16.mxu1 %v2401_v51 }
 0x2b4   : > { %2315 = vmatpush3.bf16.msra.mxu1 %v2401_v51 }
 0x37a   : > { %v1610_v52 = vpop.f32.mrb[8].mxu1 }
 0x37b   : > { %v1611_v3 = vadd.f32 %v1610_v52, %v1548_v62  ;;  %v2300_v38 = vpop.f32.mrb[9].mxu1  ;;  %v2404_v52 = vld [vmem:[%s3478_s15] sm:$0xff]  }
 0x37c   : > { %v1613_v41 = vpop.f32.mrb[10].mxu1  ;;  %v2406_v38 = vld [vmem:[%s3478_s15 + $0x10] sm:$0xff]  }
 0x37d   : > { %v2194_v5 = vmul.f32 -1.442695, %v1611_v3  ;;  %v2301_v6 = vpop.f32.mrb[11].mxu1  ;;  %v2407_v41 = vld [vmem:[%s3478_s15 + $0x18] sm:$0xff]  }
 0x37f   : > { %2504 = vpow2.f32 %v2194_v5  ;;  %v2207_v5 = vld [vmem:[%s3477_s14] ss:$0 sm:$0xff] }
 0x389   : > { %v2505_v61 = vpop.eup %2504 }
 0x38a   : > { %v1619_v8 = vadd.f32 1.0, %v2505_v61 }
 0x38c   : > { %2506 = vrcp.f32 %v1619_v8 }
 0x396   : > { %v2507_v53 = vpop.eup %2506 }
 0x397   : > { %v1622_v42 = vmul.f32 %v2507_v53, %v1611_v3  ;;  %v2405_v3 = vld [vmem:[%s3478_s15 + $0x8] sm:$0xff]  }
 0x399   : > { %v1623_v32 = vpack.c.bf16 %v1622_v42, %v1622_v42 }
 0x39b   : > { %2305 = vmatmul.mubr.msk.bf16.vlgmr.msra.gmra.mrb[8].mxu0 %vm741_vm3, %v1623_v32 }
 0x46e   : > { %v1670_v15 = vpop.f32.mrb[8].mxu0 }
 0x46f   : > { %v1671_v7 = vadd.f32 %v1670_v15, %v1626_v18  ;;  %v2306_v23 = vpop.f32.mrb[9].mxu0 }
 0x470   : > { %v1673_v60 = vpop.f32.mrb[10].mxu0 }
 0x471   : > { %v2197_v2 = vmul.f32 -1.442695, %v1671_v7  ;;  %v2307_v11 = vpop.f32.mrb[11].mxu0 }
 0x473   : > { %2508 = vpow2.f32 %v2197_v2 }
 0x47d   : > { %v2509_v19 = vpop.eup %2508 }
 0x47e   : > { %v1679_v22 = vadd.f32 1.0, %v2509_v19 }
 0x480   : > { %2510 = vrcp.f32 %v1679_v22 }
 0x48a   : > { %v2511_v33 = vpop.eup %2510 }
 0x48b   : > { %v1685_v46 = vrot.slane %v2511_v33, %v3526_v37 }
 0x48d   : > { %v1686_v1 = vmul.f32 %v1685_v46, %v3304_v57  ;;  %v1687_v21 = vmul.f32 %v1685_v46, %v3306_v50  ;;  %v1688_v4 = vmul.f32 %v1685_v46, %v3308_v63  ;;  %v1689_v40 = vmul.f32 %v1685_v46, %v3310_v35  ;;  %v2402_v35 = vld [vmem:[%s3476_s13] sm:$0xff]  }
 0x48e   : > { %v1690_v30 = vmul.f32 %v1685_v46, %v3318_v25  ;;  %v1691_v59 = vmul.f32 %v1685_v46, %v3320_v12  ;;  %v1692_v57 = vmul.f32 %v1685_v46, %v3322_v49  ;;  %v1693_v50 = vmul.f32 %v1685_v46, %v3331_v0  ;;  %2324 = vmatprep.subr.bf16.mxu0 %v2402_v35  ;;  %v2403_v25 = vld [vmem:[%s3476_s13 + $0x8] sm:$0xff]  }
 0x48f   : > { %v1694_v45 = vpack.c.bf16 %v1687_v21, %v1686_v1  ;;  %v1695_v48 = vpack.c.bf16 %v1689_v40, %v1688_v4  ;;  %2325 = vmatpush3.bf16.msra.mxu0 %v2402_v35  ;;  %v3527_v12 = vmov 0.0  }
 0x490   : > { %v1696_v56 = vpack.c.bf16 %v1691_v59, %v1690_v30  ;;  %v1697_v63 = vpack.c.bf16 %v1693_v50, %v1692_v57  ;;  %2326 = vmatprep.subr.bf16.mxu0 %v2403_v25 }
 0x491   : > { %2316 = vmatprep.mubr.msk.bf16.mxu1 %vm875_vm4, %v1694_v45 }
 0x492   : > { %2317 = vmatmul.mubr.msk.bf16.vlgmr.msra.gmra.mrb[12].mxu1 %vm875_vm4, %v1695_v48 }
 0x493   : > { %2320 = vmatprep.mubr.msk.bf16.mxu1 %vm875_vm4, %v1696_v56  ;;  %2327 = vmatpush3.bf16.msra.mxu0 %v2403_v25 }
 0x494   : > { %2336 = vmatprep.subr.bf16.mxu0 %v3527_v12 }
 0x49a   : > { %2321 = vmatmul.mubr.msk.bf16.gmra.mrb[16].mxu1 %vm875_vm4, %v1697_v63 }
 0x565   : > { %v2318_v49 = vpop.f32.mrb[12].mxu1 }
 0x566   : > { %v1783_v36 = vpop.f32.mrb[13].mxu1  ;;  %v1792_v14 = vadd.f32 %v2318_v49, %v2198_v16 }
 0x567   : > { %v2319_v31 = vpop.f32.mrb[14].mxu1  ;;  %v1784_v26 = vadd.f32 %v2198_v16, %v1783_v36 }
 0x568   : > { %v1795_v0 = vadd.f32 %v2319_v31, %v2198_v16  ;;  %v1786_v55 = vpop.f32.mrb[15].mxu1 }
 0x569   : > { %v1787_v20 = vadd.f32 %v2198_v16, %v1786_v55 }
 0x56a   : > { %v1815_v47 = vpack.c.bf16 %v1795_v0, %v1792_v14 }
 0x56b   : > { %v1814_v43 = vpack.c.bf16 %v1787_v20, %v1784_v26 }
 0x56d   : > { %v2322_v10 = vpop.f32.mrb[16].mxu1  ;;  %2328 = vmatprep.mubr.msk.bf16.mxu0 %vm1841_vm8, %v1814_v43 }
 0x56e   : > { %v1799_v9 = vpop.f32.mrb[17].mxu1  ;;  %2329 = vmatmul.mubr.msk.bf16.vlgmr.msra.gmra.mrb[12].mxu0 %vm1841_vm8, %v1815_v47  ;;  %v1808_v39 = vadd.f32 %v2322_v10, %v2198_v16 }
 0x56f   : > { %v2323_v29 = vpop.f32.mrb[18].mxu1  ;;  %v1800_v13 = vadd.f32 %v2198_v16, %v1799_v9  ;;  %2337 = vmatpush3.bf16.msra.mxu0 %v2404_v52 }
 0x570   : > { %v1811_v17 = vadd.f32 %v2323_v29, %v2198_v16  ;;  %v1802_v58 = vpop.f32.mrb[19].mxu1  ;;  %2338 = vmatprep.subr.bf16.mxu0 %v3527_v12 }
 0x571   : > { %v1803_v54 = vadd.f32 %v2198_v16, %v1802_v58 }
 0x572   : > { %v1817_v24 = vpack.c.bf16 %v1811_v17, %v1808_v39 }
 0x573   : > { %v1816_v62 = vpack.c.bf16 %v1803_v54, %v1800_v13  ;;  %2339 = vmatpush3.bf16.msra.mxu0 %v2405_v3 }
 0x574   : > { %2340 = vmatprep.subr.bf16.mxu0 %v3527_v12 }
 0x575   : > { %2332 = vmatprep.mubr.msk.bf16.mxu0 %vm1841_vm8, %v1816_v62 }
 0x576   : > { %2333 = vmatmul.mubr.msk.bf16.gmra.mrb[16].mxu0 %vm1841_vm8, %v1817_v24 }
 0x577   : > { %2344 = vmatprep.mubr.msk.bf16.mxu0 %vm2610_vm6, %v3527_v12  ;;  %2341 = vmatpush3.bf16.msra.mxu0 %v2406_v38 }
 0x578   : > { %2342 = vmatprep.subr.bf16.mxu0 %v3527_v12 }
 0x57b   : > { %2343 = vmatpush3.bf16.msra.mxu0 %v2407_v41 }
 0x641   : > { %v2330_v6 = vpop.f32.mrb[12].mxu0 }
 0x642   : > { %v1897_v61 = vadd.f32 %v2330_v6, %v2207_v5  ;;  %v1888_v8 = vpop.f32.mrb[13].mxu0 }
 0x643   : > { %v1889_v53 = vadd.f32 %v2207_v5, %v1888_v8  ;;  %v2331_v42 = vpop.f32.mrb[14].mxu0 }
 0x644   : > { %v2216_v32 = vmul.f32 -1.442695, %v1897_v61  ;;  %v1900_v44 = vadd.f32 %v2331_v42, %v2207_v5  ;;  %v1891_v28 = vpop.f32.mrb[15].mxu0 }
 0x645   : > { %v2214_v27 = vmul.f32 -1.442695, %v1889_v53  ;;  %v1892_v51 = vadd.f32 %v2207_v5, %v1891_v28 }
 0x646   : > { %2512 = vpow2.f32 %v2216_v32  ;;  %v2217_v18 = vmul.f32 -1.442695, %v1900_v44 }
 0x647   : > { %2514 = vpow2.f32 %v2214_v27  ;;  %v2215_v15 = vmul.f32 -1.442695, %v1892_v51 }
 0x648   : > { %2516 = vpow2.f32 %v2217_v18 }
 0x649   : > { %2518 = vpow2.f32 %v2215_v15  ;;  %v2334_v7 = vpop.f32.mrb[16].mxu0 }
 0x64a   : > { %v1913_v23 = vadd.f32 %v2334_v7, %v2207_v5  ;;  %v1904_v60 = vpop.f32.mrb[17].mxu0 }
 0x64b   : > { %v1905_v2 = vadd.f32 %v2207_v5, %v1904_v60  ;;  %v2335_v11 = vpop.f32.mrb[18].mxu0 }
 0x64c   : > { %v2220_v19 = vmul.f32 -1.442695, %v1913_v23  ;;  %v1916_v22 = vadd.f32 %v2335_v11, %v2207_v5  ;;  %v1907_v33 = vpop.f32.mrb[19].mxu0 }
 0x64d   : > { %v2218_v34 = vmul.f32 -1.442695, %v1905_v2  ;;  %v1908_v37 = vadd.f32 %v2207_v5, %v1907_v33 }
 0x64e   : > { %2520 = vpow2.f32 %v2220_v19  ;;  %v2221_v46 = vmul.f32 -1.442695, %v1916_v22 }
 0x64f   : > { %2522 = vpow2.f32 %v2218_v34  ;;  %v2219_v1 = vmul.f32 -1.442695, %v1908_v37 }
 0x650   : > { %v2513_v21 = vpop.eup %2512  ;;  %2524 = vpow2.f32 %v2221_v46 }
 0x651   : > { %v2515_v4 = vpop.eup %2514  ;;  %v1945_v40 = vadd.f32 1.0, %v2513_v21  ;;  %2526 = vpow2.f32 %v2219_v1 }
 0x652   : > { %v2517_v30 = vpop.eup %2516  ;;  %v1943_v59 = vadd.f32 1.0, %v2515_v4 }
 0x653   : > { %v2519_v45 = vpop.eup %2518  ;;  %2528 = vrcp.f32 %v1945_v40  ;;  %v1946_v48 = vadd.f32 1.0, %v2517_v30 }
 0x654   : > { %2530 = vrcp.f32 %v1943_v59  ;;  %v1944_v56 = vadd.f32 1.0, %v2519_v45 }
 0x655   : > { %2532 = vrcp.f32 %v1946_v48 }
 0x656   : > { %2534 = vrcp.f32 %v1944_v56 }
 0x658   : > { %v2521_v57 = vpop.eup %2520 }
 0x659   : > { %v2523_v50 = vpop.eup %2522  ;;  %v1949_v63 = vadd.f32 1.0, %v2521_v57 }
 0x65a   : > { %v2525_v35 = vpop.eup %2524  ;;  %v1947_v25 = vadd.f32 1.0, %v2523_v50 }
 0x65b   : > { %v2527_v12 = vpop.eup %2526  ;;  %2536 = vrcp.f32 %v1949_v63  ;;  %v1950_v49 = vadd.f32 1.0, %v2525_v35 }
 0x65c   : > { %2538 = vrcp.f32 %v1947_v25  ;;  %v1948_v16 = vadd.f32 1.0, %v2527_v12 }
 0x65d   : > { %v2529_v36 = vpop.eup %2528  ;;  %2540 = vrcp.f32 %v1950_v49 }
 0x65e   : > { %v2531_v31 = vpop.eup %2530  ;;  %2542 = vrcp.f32 %v1948_v16  ;;  %v1969_v26 = vmul.f32 %v2529_v36, %v1897_v61 }
 0x65f   : > { %v2533_v14 = vpop.eup %2532  ;;  %v1967_v0 = vmul.f32 %v2531_v31, %v1889_v53 }
 0x660   : > { %v2535_v55 = vpop.eup %2534  ;;  %v1970_v43 = vmul.f32 %v2533_v14, %v1900_v44  ;;  %v1978_v39 = vsel %vm875_vm4, %v1969_v26, 0.0 }
 0x661   : > { %v1968_v20 = vmul.f32 %v2535_v55, %v1892_v51  ;;  %v1975_v47 = vsel %vm875_vm4, %v1967_v0, 0.0 }
 0x662   : > { %v1980_v54 = vsel %vm875_vm4, %v1970_v43, 0.0 }
 0x663   : > { %v1976_v10 = vsel %vm875_vm4, %v1968_v20, 0.0 }
 0x664   : > { %v1977_v9 = vadd.f32 %v1976_v10, %v1975_v47 }
 0x665   : > { %v2537_v29 = vpop.eup %2536 }
 0x666   : > { %v2539_v17 = vpop.eup %2538  ;;  %v1979_v58 = vadd.f32 %v1978_v39, %v1977_v9  ;;  %v1973_v3 = vmul.f32 %v2537_v29, %v1913_v23 }
 0x667   : > { %v2541_v13 = vpop.eup %2540  ;;  %v1971_v24 = vmul.f32 %v2539_v17, %v1905_v2  ;;  %v2006_v2 = vld [vmem:[%s3479_s16] sm:$0x1] }
 0x668   : > { %v2543_v62 = vpop.eup %2542  ;;  %v1981_v52 = vadd.f32 %v1980_v54, %v1979_v58  ;;  %v1974_v6 = vmul.f32 %v2541_v13, %v1916_v22  ;;  %v1986_v53 = vsel %vm875_vm4, %v1973_v3, 0.0 }
 0x669   : > { %v1982_v38 = vsel %vm875_vm4, %v1971_v24, 0.0  ;;  %v1972_v41 = vmul.f32 %v2543_v62, %v1908_v37 }
 0x66a   : > { %v1983_v5 = vadd.f32 %v1982_v38, %v1981_v52  ;;  %v1988_v32 = vsel %vm875_vm4, %v1974_v6, 0.0 }
 0x66b   : > { %v1984_v61 = vsel %vm875_vm4, %v1972_v41, 0.0 }
 0x66c   : > { %v1985_v8 = vadd.f32 %v1984_v61, %v1983_v5 }
 0x66e   : > { %v1987_v42 = vadd.f32 %v1986_v53, %v1985_v8 }
 0x670   : > { %v1989_v44 = vadd.f32 %v1988_v32, %v1987_v42 }
 0x672   : > { %v1990_v28 = vrot.slane %v1989_v44, 4 }
 0x674   : > { %v1991_v27 = vadd.f32 %v1990_v28, %v1989_v44 }
 0x676   : > { %v1992_v51 = vrot.slane %v1991_v27, 2 }
 0x678   : > { %v1993_v18 = vadd.f32 %v1992_v51, %v1991_v27 }
 0x67a   : > { %v1994_v15 = vrot.slane %v1993_v18, 1 }
 0x67c   : > { %v1995_v7 = vadd.f32 %v1994_v15, %v1993_v18 }
 0x67e   : > { %v1996_v23 = vmul.f32 0.015625, %v1995_v7 }
 0x680   : > { %v1997_v60 = vpack.c.bf16 %v1996_v23, %v1996_v23 }
 0x682   : > { %2345 = vmatmul.mubr.msk.bf16.vlgmr.msra.gmra.mrb[20].mxu0 %vm875_vm4, %v1997_v60 }
 0x755   : > { %v2068_v11 = vpop.f32.mrb[20].mxu0 }
 0x756   : > { %v2069_v19 = vadd.f32 %v2068_v11, %v2006_v2  ;;  %v2346_v22 = vpop.f32.mrb[21].mxu0 }
 0x757   : > { %v2071_v33 = vpop.f32.mrb[22].mxu0 }
 0x758   : > { %v2347_v34 = vpop.f32.mrb[23].mxu0  ;;  %2075 = vst.msk [vmem:[%s540_s21] sm:$0x1] %vm2074_vm9, %v2069_v19 }
 0x759   : > { %2557 = shalt.err (!%p2554_p3)
}
 0x75a   : > { %s2558_s19 = scalar_lea.hbm %s3421_s2, 16  ;;  %s2562_s26 = scalar_lea.hbm %s3480_s17, 32 }
 0x75b   : > { %p2559_p4 = scmp.ne.s32.totalorder %s3421_s2, %s2558_s19  ;;  %p2563_p9 = scmp.lt.u32.totalorder %s3421_s2, %s3480_s17 }
 0x75c   : > { %p2564_p10 = scmp.lt.u32.totalorder %s2562_s26, %s2558_s19  ;;  %p2566_p12 = scmp.lt.u32.totalorder %s2558_s19, %s3421_s2 }
 0x75d   : > { %p2560_p7 = pnand %p2559_p4, %p2740_p5 }
 0x75e   : > { %p2565_p11 = por %p2564_p10, %p2563_p9 }
 0x75f   : > { %p2561_p8 = pneg %p2560_p7 }
 0x760   : > { %p2567_p13 = por %p2566_p12, %p2565_p11 }
 0x762   : > { %p2568_p0 = pnand %p2567_p13, %p2561_p8 }
 0x764   : > { %2571 = shalt.err (!%p2568_p0)
}
 0x765   : > { %2348 = dma.vmem_to_hbm [thread:$0]  (%p2740_p5), %s3423_s22, 16, %s3421_s2, %s2077_s28  }
 0x766 PF: > { %p2354_p1 = scmp.ge.s32.totalorder %s2606_s27, 2  ;;  %s2101_s30 = sand.u32 1, %s2594_s24  }
 0x767   : > { %s2102_s29 = scalar_lea.sflag [#allocation4], %s2101_s30 }
 0x768   : > { %p2351_p2 = pnand %p2354_p1, %p2744_p6 }
 0x76a   : > { %2589 = dma.done.wait (!%p2351_p2), %s2102_s29, 16  }
 0x76b   : > { %2591 = vsyncadd (!%p2351_p2), %s2102_s29, 4294967280  ;;  %s3528_s27 = sld [smem:[#allocation7_spill]]  ;;  %s3529_s19 = sld [smem:[#allocation6_spill]] }
 0x76c   : > { %s3530_s26 = sld [smem:[#allocation8_spill]]  ;;  %s3531_s24 = smov %s2598_s25 }
 0x771   : > { %p27_p3 = scmp.ge.s32.totalorder %s3528_s27, 4   ;;  %s3532_s25 = smov %s3529_s19 }
 0x773   :  { %29 = sbr.rel (!%p27_p3) target bundleno = 8 (0x8), region = 124 }
 0x77a   :  { %2106 = vsyncpa [#allocation4], 1 }
 0x77b   :  { %2108 = vsyncpa [#allocation4 + $0x1], 1 }

</bundles_post_ra>
